<compile_context>
chip_gen: v7x
topology: tpu7x:2x2x1
jax: 0.10.0
libtpu: 0.0.40
codegen_flags: <defaults>
</compile_context>

<pallas_src>
import functools

import jax
import jax.numpy as jnp
import numpy as np
from jax.experimental import pallas as pl
from jax.experimental.pallas import tpu as pltpu


# ------------------------------- Pallas kernel --------------------------------
def _dwconv_kernel(x_ref, w_ref, b_ref, ml_ref, mr_ref, o_ref, acc_ref, *, H, W):
    n = H * W
    bt = x_ref.shape[0]                 # batch block (static)
    w = w_ref[...]                      # [9, C]  tap k = di*3 + dj
    bias = b_ref[...]                   # [1, C]
    ml = ml_ref[...]                    # [N, 1]  1.0 where a left  neighbour exists
    mr = mr_ref[...]                    # [N, 1]  1.0 where a right neighbour exists
    nr = (H - 1) * W                    # rows that have a vertical neighbour

    for b in range(bt):                 # static unroll over the small batch block
        x = x_ref[b].astype(jnp.float32)                   # [N, C]

        # Horizontal +-1 column shifts: 2 XLU rolls + 2 mask multiplies total.
        xl = pltpu.roll(x, shift=1, axis=0) * ml            # x[n-1]; 0 at col 0
        xr = pltpu.roll(x, shift=n - 1, axis=0) * mr        # x[n+1]; 0 at col W-1

        # Same-row sources (di = 1).
        acc_ref[...] = x * w[4:5] + xl * w[3:4] + xr * w[5:6] + bias

        if H > 1:
            # Sources one row below (di = 2) feed output rows [0, H-1):
            # out[n] += x[n+W]*w7 + xl[n+W]*w6 + xr[n+W]*w8   (address-shifted read)
            acc_ref[pl.ds(0, nr), :] += (
                x[W:] * w[7:8] + xl[W:] * w[6:7] + xr[W:] * w[8:9])
            # Sources one row above (di = 0) feed output rows [1, H):
            acc_ref[pl.ds(W, nr), :] += (
                x[:nr] * w[1:2] + xl[:nr] * w[0:1] + xr[:nr] * w[2:3])

        o_ref[b] = acc_ref[...].astype(o_ref.dtype)


# --------------------------------- wrapper ------------------------------------
def _pick_batch_block(B, bytes_per_batch, budget_bytes=4 << 20):
    """Largest divisor of B s.t. x+out double-buffered fits the budget while
    (when possible) keeping >= 2 grid steps for the two v7x TensorCores."""
    best = 1
    for bt in range(1, B + 1):
        if B % bt:
            continue
        if 4 * bt * bytes_per_batch > budget_bytes:
            continue
        if B >= 2 and B // bt < 2:
            continue
        best = bt
    return best


@functools.partial(jax.jit, static_argnums=(3, 4))
def dwconv(x, w33c, bias, H, W):
    """x: [B, N, C]; w33c: [3, 3, C] (== torch weight[c, 0, di, dj]); bias: [C]."""
    B, N, C = x.shape
    assert N == H * W
    # Perf note: keep W a multiple of 8 (pad the image in the caller otherwise)
    # so the +-W row offsets stay sublane-aligned; correctness holds for any W.

    # Pad channels to a multiple of 128: full-lane vregs + lane-dense stores.
    Cp = max(128, ((C + 127) // 128) * 128)
    if Cp != C:
        x = jnp.pad(x, ((0, 0), (0, 0), (0, Cp - C)))
        w33c = jnp.pad(w33c, ((0, 0), (0, 0), (0, Cp - C)))
        bias = jnp.pad(bias, ((0, Cp - C),))

    w_taps = w33c.reshape(9, Cp).astype(jnp.float32)
    bias2 = bias.reshape(1, Cp).astype(jnp.float32)

    # Column-border validity masks, computed once and kept resident in VMEM.
    col = jnp.arange(N, dtype=jnp.int32) % W
    mask_l = (col >= 1).astype(jnp.float32).reshape(N, 1)
    mask_r = (col < W - 1).astype(jnp.float32).reshape(N, 1)

    bt = _pick_batch_block(B, N * Cp * x.dtype.itemsize)
    kernel = functools.partial(_dwconv_kernel, H=H, W=W)

    out = pl.pallas_call(
        kernel,
        out_shape=jax.ShapeDtypeStruct((B, N, Cp), x.dtype),
        grid_spec=pltpu.PrefetchScalarGridSpec(
            num_scalar_prefetch=0,
            grid=(B // bt,),
            in_specs=[
                pl.BlockSpec((bt, N, Cp), lambda i: (i, 0, 0)),   # x (pipelined)
                pl.BlockSpec((9, Cp), lambda i: (0, 0)),          # taps (resident)
                pl.BlockSpec((1, Cp), lambda i: (0, 0)),          # bias (resident)
                pl.BlockSpec((N, 1), lambda i: (0, 0)),           # left-valid mask
                pl.BlockSpec((N, 1), lambda i: (0, 0)),           # right-valid mask
            ],
            out_specs=pl.BlockSpec((bt, N, Cp), lambda i: (i, 0, 0)),
            scratch_shapes=[pltpu.VMEM((N, Cp), jnp.float32)],    # f32 accumulator
        ),
        compiler_params=pltpu.CompilerParams(
            dimension_semantics=("parallel",)),
    )(x, w_taps, bias2, mask_l, mask_r)

    return out[..., :C] if Cp != C else out


# ----------------------------- pure-JAX reference ------------------------------
def ref_dwconv(x, w33c, bias, H, W):
    B, N, C = x.shape
    xi = x.reshape(B, H, W, C)
    xp = jnp.pad(xi, ((0, 0), (1, 1), (1, 1), (0, 0)))
    out = jnp.zeros_like(xi) + bias
    for di in range(3):
        for dj in range(3):
            out = out + xp[:, di:di + H, dj:dj + W, :] * w33c[di, dj]
    return out.reshape(B, N, C)


# ------------------------------------ main -------------------------------------
if __name__ == "__main__":
    B, H, W, C = 2, 16, 16, 128          # C = 128 -> full-lane vregs; W % 8 == 0
    N = H * W

    key = jax.random.PRNGKey(0)
    kx, kw, kb = jax.random.split(key, 3)
    x = jax.random.normal(kx, (B, N, C), jnp.float32)
    w = 0.2 * jax.random.normal(kw, (3, 3, C), jnp.float32)   # w[di, dj, c]
    bias = 0.1 * jax.random.normal(kb, (C,), jnp.float32)

    out = jax.block_until_ready(dwconv(x, w, bias, H, W))
    ref = jax.block_until_ready(ref_dwconv(x, w, bias, H, W))
    assert out.shape == (B, N, C)
    np.testing.assert_allclose(np.asarray(out), np.asarray(ref), rtol=1e-5, atol=1e-5)
    print("KERNEL_OK")
</pallas_src>

<mosaic_0001>
module attributes {stable_mosaic.version = 11 : i64} {
  func.func @_dwconv_kernel(%arg0: i32, %arg1: memref<1x256x128xf32, #tpu.memory_space<vmem>>, %arg2: memref<9x128xf32, #tpu.memory_space<vmem>>, %arg3: memref<1x128xf32, #tpu.memory_space<vmem>>, %arg4: memref<256x1xf32, #tpu.memory_space<vmem>>, %arg5: memref<256x1xf32, #tpu.memory_space<vmem>>, %arg6: memref<1x256x128xf32, #tpu.memory_space<vmem>>, %arg7: memref<256x128xf32, #tpu.memory_space<vmem>>) attributes {dimension_semantics = [#tpu.dimension_semantics<parallel>], iteration_bounds = array<i64: 2>, scalar_prefetch = 0 : i64, scratch_operands = 1 : i64, tpu.core_type = #tpu.core_type<tc>, window_params = [{transform_indices = @transform_0, window_bounds = array<i64: 1, 256, 128>}, {pipeline_mode = #tpu.pipeline_mode<synchronous>, transform_indices = @transform_1, window_bounds = array<i64: 9, 128>}, {pipeline_mode = #tpu.pipeline_mode<synchronous>, transform_indices = @transform_2, window_bounds = array<i64: 1, 128>}, {pipeline_mode = #tpu.pipeline_mode<synchronous>, transform_indices = @transform_3, window_bounds = array<i64: 256, 1>}, {pipeline_mode = #tpu.pipeline_mode<synchronous>, transform_indices = @transform_4, window_bounds = array<i64: 256, 1>}, {transform_indices = @transform_5, window_bounds = array<i64: 1, 256, 128>}]} {
    %c0 = arith.constant 0 : index
    %c0_0 = arith.constant 0 : index
    %0 = vector.load %arg2[%c0, %c0_0] : memref<9x128xf32, #tpu.memory_space<vmem>>, vector<9x128xf32>
    %c0_1 = arith.constant 0 : index
    %c0_2 = arith.constant 0 : index
    %1 = vector.load %arg3[%c0_1, %c0_2] : memref<1x128xf32, #tpu.memory_space<vmem>>, vector<1x128xf32>
    %c0_3 = arith.constant 0 : index
    %c0_4 = arith.constant 0 : index
    %2 = vector.load %arg4[%c0_3, %c0_4] : memref<256x1xf32, #tpu.memory_space<vmem>>, vector<256x1xf32>
    %c0_5 = arith.constant 0 : index
    %c0_6 = arith.constant 0 : index
    %3 = vector.load %arg5[%c0_5, %c0_6] : memref<256x1xf32, #tpu.memory_space<vmem>>, vector<256x1xf32>
    %c0_7 = arith.constant 0 : index
    %c0_8 = arith.constant 0 : index
    %c0_9 = arith.constant 0 : index
    %4 = vector.load %arg1[%c0_7, %c0_8, %c0_9] : memref<1x256x128xf32, #tpu.memory_space<vmem>>, vector<1x256x128xf32>
    %5 = vector.shape_cast %4 : vector<1x256x128xf32> to vector<256x128xf32>
    %c1_i32 = arith.constant 1 : i32
    %6 = tpu.dynamic_rotate %5 by %c1_i32 dim 0 : vector<256x128xf32>, i32 -> vector<256x128xf32>
    %7 = vector.broadcast %2 : vector<256x1xf32> to vector<256x128xf32>
    %8 = arith.mulf %6, %7 : vector<256x128xf32>
    %c255_i32 = arith.constant 255 : i32
    %9 = tpu.dynamic_rotate %5 by %c255_i32 dim 0 : vector<256x128xf32>, i32 -> vector<256x128xf32>
    %10 = vector.broadcast %3 : vector<256x1xf32> to vector<256x128xf32>
    %11 = arith.mulf %9, %10 : vector<256x128xf32>
    %12 = vector.extract_strided_slice %0 {offsets = [4, 0], sizes = [1, 128], strides = [1, 1]} : vector<9x128xf32> to vector<1x128xf32>
    %13 = vector.broadcast %12 : vector<1x128xf32> to vector<256x128xf32>
    %14 = arith.mulf %5, %13 : vector<256x128xf32>
    %15 = vector.extract_strided_slice %0 {offsets = [3, 0], sizes = [1, 128], strides = [1, 1]} : vector<9x128xf32> to vector<1x128xf32>
    %16 = vector.broadcast %15 : vector<1x128xf32> to vector<256x128xf32>
    %17 = arith.mulf %8, %16 : vector<256x128xf32>
    %18 = arith.addf %14, %17 : vector<256x128xf32>
    %19 = vector.extract_strided_slice %0 {offsets = [5, 0], sizes = [1, 128], strides = [1, 1]} : vector<9x128xf32> to vector<1x128xf32>
    %20 = vector.broadcast %19 : vector<1x128xf32> to vector<256x128xf32>
    %21 = arith.mulf %11, %20 : vector<256x128xf32>
    %22 = arith.addf %18, %21 : vector<256x128xf32>
    %23 = vector.broadcast %1 : vector<1x128xf32> to vector<256x128xf32>
    %24 = arith.addf %22, %23 : vector<256x128xf32>
    %c0_10 = arith.constant 0 : index
    %c0_11 = arith.constant 0 : index
    %25 = vector.load %arg7[%c0_10, %c0_11] : memref<256x128xf32, #tpu.memory_space<vmem>>, vector<256x128xf32>
    tpu.vector_store %arg7[%c0_10, %c0_11], %24 {strides = array<i32>} : memref<256x128xf32, #tpu.memory_space<vmem>>, vector<256x128xf32>,
    %c0_12 = arith.constant 0 : index
    %c0_13 = arith.constant 0 : index
    %26 = vector.load %arg7[%c0_12, %c0_13] : memref<256x128xf32, #tpu.memory_space<vmem>>, vector<240x128xf32>
    %27 = vector.extract_strided_slice %5 {offsets = [16, 0], sizes = [240, 128], strides = [1, 1]} : vector<256x128xf32> to vector<240x128xf32>
    %28 = vector.extract_strided_slice %0 {offsets = [7, 0], sizes = [1, 128], strides = [1, 1]} : vector<9x128xf32> to vector<1x128xf32>
    %29 = vector.broadcast %28 : vector<1x128xf32> to vector<240x128xf32>
    %30 = arith.mulf %27, %29 : vector<240x128xf32>
    %31 = vector.extract_strided_slice %8 {offsets = [16, 0], sizes = [240, 128], strides = [1, 1]} : vector<256x128xf32> to vector<240x128xf32>
    %32 = vector.extract_strided_slice %0 {offsets = [6, 0], sizes = [1, 128], strides = [1, 1]} : vector<9x128xf32> to vector<1x128xf32>
    %33 = vector.broadcast %32 : vector<1x128xf32> to vector<240x128xf32>
    %34 = arith.mulf %31, %33 : vector<240x128xf32>
    %35 = arith.addf %30, %34 : vector<240x128xf32>
    %36 = vector.extract_strided_slice %11 {offsets = [16, 0], sizes = [240, 128], strides = [1, 1]} : vector<256x128xf32> to vector<240x128xf32>
    %37 = vector.extract_strided_slice %0 {offsets = [8, 0], sizes = [1, 128], strides = [1, 1]} : vector<9x128xf32> to vector<1x128xf32>
    %38 = vector.broadcast %37 : vector<1x128xf32> to vector<240x128xf32>
    %39 = arith.mulf %36, %38 : vector<240x128xf32>
    %40 = arith.addf %35, %39 : vector<240x128xf32>
    %41 = arith.addf %26, %40 : vector<240x128xf32>
    %c0_14 = arith.constant 0 : index
    %c0_15 = arith.constant 0 : index
    %42 = vector.load %arg7[%c0_14, %c0_15] : memref<256x128xf32, #tpu.memory_space<vmem>>, vector<240x128xf32>
    tpu.vector_store %arg7[%c0_14, %c0_15], %41 {strides = array<i32>} : memref<256x128xf32, #tpu.memory_space<vmem>>, vector<240x128xf32>,
    %c16 = arith.constant 16 : index
    %c0_16 = arith.constant 0 : index
    %43 = vector.load %arg7[%c16, %c0_16] : memref<256x128xf32, #tpu.memory_space<vmem>>, vector<240x128xf32>
    %44 = vector.extract_strided_slice %5 {offsets = [0, 0], sizes = [240, 128], strides = [1, 1]} : vector<256x128xf32> to vector<240x128xf32>
    %45 = vector.extract_strided_slice %0 {offsets = [1, 0], sizes = [1, 128], strides = [1, 1]} : vector<9x128xf32> to vector<1x128xf32>
    %46 = vector.broadcast %45 : vector<1x128xf32> to vector<240x128xf32>
    %47 = arith.mulf %44, %46 : vector<240x128xf32>
    %48 = vector.extract_strided_slice %8 {offsets = [0, 0], sizes = [240, 128], strides = [1, 1]} : vector<256x128xf32> to vector<240x128xf32>
    %49 = vector.extract_strided_slice %0 {offsets = [0, 0], sizes = [1, 128], strides = [1, 1]} : vector<9x128xf32> to vector<1x128xf32>
    %50 = vector.broadcast %49 : vector<1x128xf32> to vector<240x128xf32>
    %51 = arith.mulf %48, %50 : vector<240x128xf32>
    %52 = arith.addf %47, %51 : vector<240x128xf32>
    %53 = vector.extract_strided_slice %11 {offsets = [0, 0], sizes = [240, 128], strides = [1, 1]} : vector<256x128xf32> to vector<240x128xf32>
    %54 = vector.extract_strided_slice %0 {offsets = [2, 0], sizes = [1, 128], strides = [1, 1]} : vector<9x128xf32> to vector<1x128xf32>
    %55 = vector.broadcast %54 : vector<1x128xf32> to vector<240x128xf32>
    %56 = arith.mulf %53, %55 : vector<240x128xf32>
    %57 = arith.addf %52, %56 : vector<240x128xf32>
    %58 = arith.addf %43, %57 : vector<240x128xf32>
    %c16_17 = arith.constant 16 : index
    %c0_18 = arith.constant 0 : index
    %59 = vector.load %arg7[%c16_17, %c0_18] : memref<256x128xf32, #tpu.memory_space<vmem>>, vector<240x128xf32>
    tpu.vector_store %arg7[%c16_17, %c0_18], %58 {strides = array<i32>} : memref<256x128xf32, #tpu.memory_space<vmem>>, vector<240x128xf32>,
    %c0_19 = arith.constant 0 : index
    %c0_20 = arith.constant 0 : index
    %60 = vector.load %arg7[%c0_19, %c0_20] : memref<256x128xf32, #tpu.memory_space<vmem>>, vector<256x128xf32>
    %c0_21 = arith.constant 0 : index
    %c0_22 = arith.constant 0 : index
    %c0_23 = arith.constant 0 : index
    %61 = vector.load %arg6[%c0_21, %c0_22, %c0_23] : memref<1x256x128xf32, #tpu.memory_space<vmem>>, vector<1x256x128xf32>
    %62 = vector.shape_cast %61 : vector<1x256x128xf32> to vector<256x128xf32>
    %63 = vector.shape_cast %60 : vector<256x128xf32> to vector<1x256x128xf32>
    tpu.vector_store %arg6[%c0_21, %c0_22, %c0_23], %63 {strides = array<i32>} : memref<1x256x128xf32, #tpu.memory_space<vmem>>, vector<1x256x128xf32>,
    return
  }
  func.func @transform_0(%arg0: i32) -> (i32, i32, i32) {
    %c0_i32 = arith.constant 0 : i32
    %c0_i32_0 = arith.constant 0 : i32
    %c0_i32_1 = arith.constant 0 : i32
    return %arg0, %c0_i32, %c0_i32_0 : i32, i32, i32
  }
  func.func @transform_1(%arg0: i32) -> (i32, i32) {
    %c0_i32 = arith.constant 0 : i32
    %c0_i32_0 = arith.constant 0 : i32
    %c0_i32_1 = arith.constant 0 : i32
    return %c0_i32, %c0_i32_0 : i32, i32
  }
  func.func @transform_2(%arg0: i32) -> (i32, i32) {
    %c0_i32 = arith.constant 0 : i32
    %c0_i32_0 = arith.constant 0 : i32
    %c0_i32_1 = arith.constant 0 : i32
    return %c0_i32, %c0_i32_0 : i32, i32
  }
  func.func @transform_3(%arg0: i32) -> (i32, i32) {
    %c0_i32 = arith.constant 0 : i32
    %c0_i32_0 = arith.constant 0 : i32
    %c0_i32_1 = arith.constant 0 : i32
    return %c0_i32, %c0_i32_0 : i32, i32
  }
  func.func @transform_4(%arg0: i32) -> (i32, i32) {
    %c0_i32 = arith.constant 0 : i32
    %c0_i32_0 = arith.constant 0 : i32
    %c0_i32_1 = arith.constant 0 : i32
    return %c0_i32, %c0_i32_0 : i32, i32
  }
  func.func @transform_5(%arg0: i32) -> (i32, i32, i32) {
    %c0_i32 = arith.constant 0 : i32
    %c0_i32_0 = arith.constant 0 : i32
    %c0_i32_1 = arith.constant 0 : i32
    return %arg0, %c0_i32, %c0_i32_0 : i32, i32, i32
  }
}

</mosaic_0001>

<bundles_post_ra>
// kernel: dwconv.1
= control target key start
LH: loop header
LB: loop body
LE: loop exit
PB: predicated region body
PF: predicated region fallthrough
CT: control target
= control target key end

     0   :  { %10 = vsyncpa [#allocation4], 0  ;;  %s3722_s0 = inlined_call_operand.vmem [shape: f32[2,256,128], index: 0, kind: input, shape index: {}]   ;;  %s3723_s1 = inlined_call_operand.vmem [shape: f32[9,128], index: 1, kind: input, shape index: {}]   ;;  %s3724_s2 = inlined_call_operand.vmem [shape: f32[1,128], index: 2, kind: input, shape index: {}]   ;;  %s3725_s3 = inlined_call_operand.vmem [shape: f32[256,1], index: 3, kind: input, shape index: {}]   ;;  %s3726_s4 = inlined_call_operand.vmem [shape: f32[256,1], index: 4, kind: input, shape index: {}]   ;;  %s3727_s5 = inlined_call_operand.hbm [shape: f32[2,256,128], index: 5, kind: output, shape index: {}]  }
   0x1   :  { %12 = vsyncpa [#allocation4 + $0x1], 0  ;;  %s1882_s18 = smov 0   ;;  %s1884_s19 = smov 0  }
   0x2   :  { %s1886_s20 = smov 0   ;;  %s1888_s21 = smov 0  }
   0x3 LB: > { %s1903_s22 = sadd.s32 4294967295, %s1846_s21   ;;  %s1724_s23 = sadd.s32 4294967294, %s1846_s21   ;;  %s1846_s21 = sphi %s1888_s21, %s4123_s21   ;;  %s1842_s20 = sphi %s1886_s20, %s4122_s20   ;;  %s1838_s19 = sphi %s1884_s19, %s4121_s19   ;;  %s1834_s18 = sphi %s1882_s18, %s4120_s18  }
   0x4   : > { %s1907_s24 = sadd.s32 1, %s1846_s21   ;;  %s135_s25 = sadd.s32 1, %s1842_s20 }
   0x5   : > { %s132_s26 = ssub.s32 %s1846_s21, %s1907_s24  ;;  %p145_p0 = scmp.ne.s32.totalorder %s1842_s20, %s1838_s19 }
   0x6   : > { %p133_p1 = scmp.eq.s32.totalorder %s132_s26, 0  ;;  %p146_p2 = scmp.eq.s32.totalorder %s1903_s22, 1 }
   0x7   : > { %p151_p3 = scmp.ne.s32.totalorder %s1838_s19, %s1834_s18  ;;  %p152_p4 = scmp.eq.s32.totalorder %s1724_s23, 1 }
   0x8   : > { %s1918_s27 = scalar_select %p133_p1, %s1842_s20, %s135_s25  }
   0x9   : > { %p1920_p5 = por %p146_p2, %p145_p0  ;;  %p1924_p6 = por %p152_p4, %p151_p3 }
   0xa   : > { %p1727_p7 = scmp.ge.s32.totalorder %s1846_s21, 1  ;;  %p190_p8 = scmp.lt.s32.totalorder %s1846_s21, 3 }
   0xc   : > { %p191_p9 = pnand %p1727_p7, %p190_p8 }
   0xe   : > { %194 = sbr.rel (%p191_p9) target bundleno = 322 (0x142), region = 40 }
  0x15   : > { %v228_v0 = vld [vmem:[%s3725_s3 + $0x10] sm:$0xff]  ;;  %v226_v1 = vld [vmem:[%s3725_s3] sm:$0xff]  ;;  %v1848_v2 = vmov 0   ;;  %v229_v3 = vld [vmem:[%s3725_s3 + $0x18] sm:$0xff]  ;;  %p218_p10 = scmp.lt.s32.totalorder %s1903_s22, 1  ;;  %v354_v25 = vlaneseq  ;;  %s215_s15 = sand.u32 1, %s1838_s19  }
  0x16   : > { %1783 = vset.pattern.permute.xlu1 %v1848_v2  ;;  %1782 = vset.pattern.permute.xlu0 %v1848_v2  ;;  %v227_v4 = vld [vmem:[%s3725_s3 + $0x8] sm:$0xff]  ;;  %v230_v6 = vld [vmem:[%s3725_s3 + $0x20] sm:$0xff]  ;;  %v233_v7 = vld [vmem:[%s3725_s3 + $0x38] sm:$0xff]  ;;  %s1728_s26 = sshll.u32 %s215_s15, 8  ;;  %s1739_s7 = sshll.u32 %s1903_s22, 12 }
  0x17   : > { %401 = vperm.xlu1 %1783, %v228_v0   ;;  %391 = vperm.xlu0 %1782, %v226_v1   ;;  %v231_v5 = vld [vmem:[%s3725_s3 + $0x28] sm:$0xff]  ;;  %v232_v8 = vld [vmem:[%s3725_s3 + $0x30] sm:$0xff]  ;;  %v234_v10 = vld [vmem:[%s3725_s3 + $0x40] sm:$0xff]  ;;  %s219_s9 = scalar_select %p218_p10, %s1903_s22, 1  ;;  %v2010_v28 = vshrl.u32 %v354_v25, 7 }
  0x18   : > { %v235_v9 = vld [vmem:[%s3725_s3 + $0x48] sm:$0xff]  ;;  %v237_v11 = vld [vmem:[%s3725_s3 + $0x58] sm:$0xff]  ;;  %v236_v12 = vld [vmem:[%s3725_s3 + $0x50] sm:$0xff]  ;;  %s3421_s6 = scalar_lea.vmem [#allocation3], %s1728_s26  ;;  %s3681_s10 = scalar_lea.sflag [#allocation4], %s215_s15 }
  0x19   : > { %v239_v13 = vld [vmem:[%s3725_s3 + $0x68] sm:$0xff]  ;;  %v238_v14 = vld [vmem:[%s3725_s3 + $0x60] sm:$0xff]  ;;  %v241_v15 = vld [vmem:[%s3725_s3 + $0x78] sm:$0xff]  ;;  %s1738_s14 = sshll.u32 %s219_s9, 8  ;;  %v840_v31 = vsub.s32 4, %v2010_v28  ;;  %v1364_v35 = vsub.s32 1, %v2010_v28 }
  0x1a   : > { %v240_v16 = vld [vmem:[%s3725_s3 + $0x70] sm:$0xff]  ;;  %v243_v17 = vld [vmem:[%s3725_s3 + $0x88] sm:$0xff]  ;;  %v242_v18 = vld [vmem:[%s3725_s3 + $0x80] sm:$0xff]  ;;  %s2028_s30 = scalar_lea.vmem %s3722_s0, %s1738_s14  ;;  %vm356_vm0 = vcmp.lt.s32.totalorder %v2010_v28, 1  ;;  %v1112_v45 = vsub.s32 7, %v2010_v28  ;;  %vm613_vm1 = vcmp.lt.s32.totalorder %v2010_v28, 7 }
  0x1b   : > { %406 = vperm.xlu1 %1783, %v229_v3   ;;  %396 = vperm.xlu0 %1782, %v227_v4   ;;  %v245_v19 = vld [vmem:[%s3725_s3 + $0x98] sm:$0xff]  ;;  %v244_v20 = vld [vmem:[%s3725_s3 + $0x90] sm:$0xff]  ;;  %v247_v21 = vld [vmem:[%s3725_s3 + $0xa8] sm:$0xff]  ;;  %s1662_s8 = sshll.u32 %s3421_s6, 4  ;;  %s1849_s12 = smov [#allocation3]   ;;  %s3673_s8 = int_to_ptr.vmem [resolvable:$true] %s1662_s8 }
  0x1c   : > { %v246_v22 = vld [vmem:[%s3725_s3 + $0xa0] sm:$0xff]  ;;  %v249_v23 = vld [vmem:[%s3725_s3 + $0xb8] sm:$0xff]  ;;  %v248_v24 = vld [vmem:[%s3725_s3 + $0xb0] sm:$0xff]  ;;  %s1784_s11 = scalar_lea.vmem %s3673_s8, 4096  ;;  %s1788_s13 = sshll.u32 %s1849_s12, 4  ;;  %s1789_s13 = int_to_ptr.vmem [resolvable:$false] %s1788_s13 }
  0x1d   : > { %v251_v26 = vld [vmem:[%s3725_s3 + $0xc8] sm:$0xff]  ;;  %v250_v27 = vld [vmem:[%s3725_s3 + $0xc0] sm:$0xff]  ;;  %v253_v29 = vld [vmem:[%s3725_s3 + $0xd8] sm:$0xff]  ;;  %p1785_p11 = scmp.ne.s32.totalorder %s3673_s8, %s1784_s11  ;;  %s1790_s14 = scalar_lea.vmem %s1789_s13, 8192 }
  0x1e   : > { %v252_v30 = vld [vmem:[%s3725_s3 + $0xd0] sm:$0xff]  ;;  %v255_v32 = vld [vmem:[%s3725_s3 + $0xe8] sm:$0xff]  ;;  %v254_v33 = vld [vmem:[%s3725_s3 + $0xe0] sm:$0xff]  ;;  %p1791_p0 = scmp.lt.s32.totalorder %s3673_s8, %s1789_s13  ;;  %p1792_p1 = scmp.lt.s32.totalorder %s1790_s14, %s1784_s11 }
  0x1f   : > { %416 = vperm.xlu1 %1783, %v231_v5   ;;  %411 = vperm.xlu0 %1782, %v230_v6   ;;  %v2033_v34 = vld [vmem:[%s3723_s1] sm:$0xff]  ;;  %v2040_v37 = vld [vmem:[%s2028_s30 + $0xe8] sm:$0xff]  ;;  %v2049_v41 = vld [vmem:[%s2028_s30 + $0xf8] sm:$0xff]  ;;  %p1786_p12 = pnand %p1785_p11, %p1920_p5 }
  0x20   : > { %v2037_v36 = vld [vmem:[%s2028_s30 + $0xe0] sm:$0xff]  ;;  %v351_v39 = vrot.slane %v2040_v37, 7  ;;  %v2046_v40 = vrot.slane %v2033_v34, %v840_v31  ;;  %v257_v42 = vld [vmem:[%s3725_s3 + $0xf8] sm:$0xff]  ;;  %v256_v43 = vld [vmem:[%s3725_s3 + $0xf0] sm:$0xff]  ;;  %v2065_v46 = vrot.slane %v2033_v34, %v1364_v35  ;;  %v353_v49 = vrot.slane %v2049_v41, 7  ;;  %p1793_p2 = por %p1792_p1, %p1791_p0 }
  0x21   : > { %v3728_v38 = vrot.slane %v2037_v36, 7  ;;  %v2072_v48 = vld [vmem:[%s2028_s30 + $0xf0] sm:$0xff]  ;;  %v259_v52 = vld [vmem:[%s3726_s4 + $0x8] sm:$0xff]  ;;  %v258_v53 = vld [vmem:[%s3726_s4] sm:$0xff]  ;;  %v2093_v55 = vrot.slane %v2033_v34, %v1112_v45  ;;  %p1787_p13 = pneg %p1786_p12 }
  0x22   : > { %v2069_v47 = vmul.f32 %v2046_v40, %v2040_v37  ;;  %v352_v50 = vrot.slane %v2072_v48, 7  ;;  %v2078_v51 = vmul.f32 %v2065_v46, %v2040_v37  ;;  %v2101_v57 = vmul.f32 %v2046_v40, %v2072_v48  ;;  %v261_v59 = vld [vmem:[%s3726_s4 + $0x18] sm:$0xff]  ;;  %v260_v60 = vld [vmem:[%s3726_s4 + $0x10] sm:$0xff]  ;;  %v263_v61 = vld [vmem:[%s3726_s4 + $0x28] sm:$0xff] }
  0x23   : > { %426 = vperm.xlu1 %1783, %v233_v7   ;;  %421 = vperm.xlu0 %1782, %v232_v8   ;;  %v2061_v44 = vsel %vm356_vm0, %v3728_v38, %v351_v39  ;;  %v2105_v58 = vmul.f32 %v2093_v55, %v2072_v48  ;;  %v262_v62 = vld [vmem:[%s3726_s4 + $0x20] sm:$0xff]  ;;  %v265_v63 = vld [vmem:[%s3726_s4 + $0x38] sm:$0xff]  ;;  %v264_v0 = vld [vmem:[%s3726_s4 + $0x30] sm:$0xff]  ;;  %v876_v7 = vsub.s32 3, %v2010_v28  ;;  %p1794_p3 = pnand %p1793_p2, %p1787_p13 }
  0x24   : > { %3733 = vst [vmem:[#allocation6_spill] sm:$0xff] %v2061_v44  ;;  %3734 = vst [vmem:[#allocation7_spill] sm:$0xff] %v2069_v47  ;;  %v2090_v54 = vsel %vm356_vm0, %v352_v50, %v353_v49  ;;  %v2097_v56 = vsel %vm356_vm0, %v351_v39, %v352_v50  ;;  %v267_v1 = vld [vmem:[%s3726_s4 + $0x48] sm:$0xff]  ;;  %v266_v2 = vld [vmem:[%s3726_s4 + $0x40] sm:$0xff] }
  0x25   : > { %3735 = vst [vmem:[#allocation8_spill] sm:$0xff] %v2078_v51  ;;  %3736 = vst [vmem:[#allocation9_spill] sm:$0xff] %v2090_v54  ;;  %v269_v3 = vld [vmem:[%s3726_s4 + $0x58] sm:$0xff]  ;;  %v268_v4 = vld [vmem:[%s3726_s4 + $0x50] sm:$0xff] }
  0x26   : > { %3737 = vst [vmem:[#allocation10_spill] sm:$0xff] %v2097_v56  ;;  %3738 = vst [vmem:[#allocation11_spill] sm:$0xff] %v2101_v57  ;;  %v2138_v5 = vld [vmem:[%s2028_s30 + $0x8] sm:$0xff]  ;;  %v2141_v6 = vld [vmem:[%s2028_s30 + $0x10] sm:$0xff] }
  0x27   : > { %436 = vperm.xlu1 %1783, %v235_v9   ;;  %431 = vperm.xlu0 %1782, %v234_v10   ;;  %3739 = vst [vmem:[#allocation12_spill] sm:$0xff] %v2105_v58  ;;  %v2145_v8 = vld [vmem:[%s2028_s30] sm:$0xff]  ;;  %v1146_v9 = vsub.s32 6, %v2010_v28  ;;  %v1398_v10 = vsub.s32 0, %v2010_v28  ;;  %v273_v25 = vld [vmem:[%s3726_s4 + $0x78] sm:$0xff]  ;;  %v2354_v44 = vld [vmem:[%s2028_s30 + $0x68] sm:$0xff] }
  0x28   : > { %v2202_v31 = vmul.f32 %v2046_v40, %v2145_v8  ;;  %v2351_v47 = vld [vmem:[%s2028_s30 + $0x60] sm:$0xff] }
  0x2b   : > { %446 = vperm.xlu1 %1783, %v237_v11   ;;  %441 = vperm.xlu0 %1782, %v236_v12   ;;  %v271_v11 = vld [vmem:[%s3726_s4 + $0x68] sm:$0xff]  ;;  %v270_v12 = vld [vmem:[%s3726_s4 + $0x60] sm:$0xff] }
  0x2f   : > { %456 = vperm.xlu1 %1783, %v239_v13   ;;  %451 = vperm.xlu0 %1782, %v238_v14   ;;  %v323_v13 = vrot.slane %v2138_v5, 7  ;;  %v324_v14 = vrot.slane %v2141_v6, 7 }
  0x33   : > { %466 = vperm.xlu1 %1783, %v241_v15   ;;  %461 = vperm.xlu0 %1782, %v240_v16   ;;  %v2158_v15 = vld [vmem:[%s2028_s30 + $0x18] sm:$0xff]  ;;  %v944_v16 = vsub.s32 5, %v2010_v28 }
  0x34   : > { %v2224_v45 = vmul.f32 %v2046_v40, %v2158_v15  ;;  %v2232_v50 = vmul.f32 %v2065_v46, %v2158_v15 }
  0x36   : > { %3742 = vst [vmem:[#allocation15_spill] sm:$0xff] %v2224_v45  ;;  %3744 = vst [vmem:[#allocation17_spill] sm:$0xff] %v2232_v50  ;;  %v2619_v50 = vld [vmem:[%s2028_s30 + $0xc0] sm:$0xff] }
  0x37   : > { %476 = vperm.xlu1 %1783, %v243_v17   ;;  %471 = vperm.xlu0 %1782, %v242_v18   ;;  %v322_v17 = vrot.slane %v2145_v8, 7  ;;  %v2163_v18 = vrot.slane %v2033_v34, %v876_v7 }
  0x3b   : > { %486 = vperm.xlu1 %1783, %v245_v19   ;;  %481 = vperm.xlu0 %1782, %v244_v20   ;;  %v2166_v19 = vld [vmem:[%s2028_s30 + $0x20] sm:$0xff]  ;;  %v2169_v20 = vld [vmem:[%s2028_s30 + $0x28] sm:$0xff] }
  0x3c   : > { %v326_v35 = vrot.slane %v2166_v19, 7  ;;  %v327_v39 = vrot.slane %v2169_v20, 7 }
  0x3e   : > { %v2276_v7 = vsel %vm356_vm0, %v326_v35, %v327_v39 }
  0x3f   : > { %496 = vperm.xlu1 %1783, %v247_v21   ;;  %491 = vperm.xlu0 %1782, %v246_v22   ;;  %v2173_v21 = vmul.f32 %v2046_v40, %v2141_v6  ;;  %v2176_v22 = vrot.slane %v2033_v34, %v1146_v9  ;;  %v2280_v9 = vmul.f32 %v2065_v46, %v2169_v20 }
  0x41   : > { %3749 = vst [vmem:[#allocation22_spill] sm:$0xff] %v2280_v9 }
  0x43   : > { %506 = vperm.xlu1 %1783, %v249_v23   ;;  %501 = vperm.xlu0 %1782, %v248_v24   ;;  %v2179_v23 = vrot.slane %v2033_v34, %v1398_v10  ;;  %v325_v24 = vrot.slane %v2158_v15, 7  ;;  %v2284_v10 = vmul.f32 %v2046_v40, %v2166_v19 }
  0x45   : > { %3750 = vst [vmem:[#allocation23_spill] sm:$0xff] %v2284_v10 }
  0x47   : > { %516 = vperm.xlu1 %1783, %v251_v26   ;;  %511 = vperm.xlu0 %1782, %v250_v27   ;;  %v272_v26 = vld [vmem:[%s3726_s4 + $0x70] sm:$0xff]  ;;  %v2190_v27 = vsel %vm356_vm0, %v323_v13, %v324_v14 }
  0x4b   : > { %526 = vperm.xlu1 %1783, %v253_v29   ;;  %521 = vperm.xlu0 %1782, %v252_v30   ;;  %v2194_v29 = vmul.f32 %v2093_v55, %v2141_v6  ;;  %v2198_v30 = vmul.f32 %v2065_v46, %v2141_v6 }
  0x4f   : > { %536 = vperm.xlu1 %1783, %v255_v32   ;;  %531 = vperm.xlu0 %1782, %v254_v33   ;;  %v2208_v32 = vsel %vm356_vm0, %v353_v49, %v322_v17  ;;  %v2211_v33 = vrot.slane %v2033_v34, %v944_v16  ;;  %v2228_v49 = vmul.f32 %v2093_v55, %v2158_v15 }
  0x51   : > { %3740 = vst [vmem:[#allocation13_spill] sm:$0xff] %v2211_v33  ;;  %3743 = vst [vmem:[#allocation16_spill] sm:$0xff] %v2228_v49 }
  0x53   : > { %546 = vperm.xlu1 %1783, %v257_v42   ;;  %541 = vperm.xlu0 %1782, %v256_v43   ;;  %v2216_v42 = vld [vmem:[%s2028_s30 + $0x30] sm:$0xff]  ;;  %v2220_v43 = vmul.f32 %v2065_v46, %v2145_v8 }
  0x54   : > { %v2331_v58 = vmul.f32 %v2046_v40, %v2216_v42  ;;  %v2335_v57 = vmul.f32 %v2093_v55, %v2216_v42  ;;  %v2343_v54 = vmul.f32 %v2065_v46, %v2216_v42 }
  0x55   : > { %3741 = vst [vmem:[#allocation14_spill] sm:$0xff] %v2220_v43 }
  0x56   : > { %3757 = vst [vmem:[#allocation30_spill] sm:$0xff] %v2331_v58  ;;  %3758 = vst [vmem:[#allocation31_spill] sm:$0xff] %v2335_v57  ;;  %v279_v58 = vld [vmem:[%s3726_s4 + $0xa8] sm:$0xff] }
  0x57   : > { %653 = vperm.xlu1 %1783, %v259_v52   ;;  %648 = vperm.xlu0 %1782, %v258_v53   ;;  %v2235_v52 = vld [vmem:[%s2028_s30 + $0x38] sm:$0xff]  ;;  %v2239_v53 = vsel %vm356_vm0, %v324_v14, %v325_v24  ;;  %3760 = vst [vmem:[#allocation33_spill] sm:$0xff] %v2343_v54 }
  0x58   : > { %v2323_v38 = vmul.f32 %v2065_v46, %v2235_v52 }
  0x5a   : > { %3755 = vst [vmem:[#allocation28_spill] sm:$0xff] %v2323_v38 }
  0x5b   : > { %663 = vperm.xlu1 %1783, %v261_v59   ;;  %658 = vperm.xlu0 %1782, %v260_v60   ;;  %v2243_v59 = vsel %vm356_vm0, %v322_v17, %v323_v13  ;;  %v2247_v60 = vmul.f32 %v2046_v40, %v2138_v5  ;;  %v2293_v13 = vmul.f32 %v2093_v55, %v2166_v19  ;;  %v2298_v17 = vld [vmem:[%s2028_s30 + $0x50] sm:$0xff] }
  0x5c   : > { %v332_v51 = vrot.slane %v2298_v17, 7  ;;  %v2425_v10 = vmul.f32 %v2093_v55, %v2298_v17 }
  0x5d   : > { %3745 = vst [vmem:[#allocation18_spill] sm:$0xff] %v2247_v60  ;;  %3751 = vst [vmem:[#allocation24_spill] sm:$0xff] %v2293_v13  ;;  %v2566_v60 = vld [vmem:[%s2028_s30 + $0xb0] sm:$0xff] }
  0x5e   : > { %3775 = vst [vmem:[#allocation48_spill] sm:$0xff] %v2425_v10  ;;  %v2447_v10 = vmul.f32 %v2065_v46, %v2354_v44  ;;  %v2691_v43 = vmul.f32 %v2093_v55, %v2566_v60 }
  0x5f   : > { %673 = vperm.xlu1 %1783, %v263_v61   ;;  %668 = vperm.xlu0 %1782, %v262_v62   ;;  %v2250_v61 = vld [vmem:[%s2028_s30 + $0x40] sm:$0xff]  ;;  %v2253_v62 = vld [vmem:[%s2028_s30 + $0x48] sm:$0xff] }
  0x60   : > { %v330_v14 = vrot.slane %v2250_v61, 7  ;;  %v331_v16 = vrot.slane %v2253_v62, 7  ;;  %v2366_v54 = vmul.f32 %v2065_v46, %v2253_v62  ;;  %3779 = vst [vmem:[#allocation52_spill] sm:$0xff] %v2447_v10  ;;  %v2467_v10 = vmul.f32 %v2046_v40, %v2351_v47  ;;  %3822 = vst [vmem:[#allocation95_spill] sm:$0xff] %v2691_v43  ;;  %v289_v43 = vld [vmem:[%s3726_s4 + $0xf8] sm:$0xff] }
  0x62   : > { %v2358_v57 = vsel %vm356_vm0, %v330_v14, %v331_v16  ;;  %3764 = vst [vmem:[#allocation37_spill] sm:$0xff] %v2366_v54  ;;  %v2398_v54 = vld [vmem:[%s2028_s30 + $0x70] sm:$0xff]  ;;  %3782 = vst [vmem:[#allocation55_spill] sm:$0xff] %v2467_v10  ;;  %v2487_v10 = vld [vmem:[%s2028_s30 + $0x98] sm:$0xff] }
  0x63   : > { %683 = vperm.xlu1 %1783, %v265_v63   ;;  %678 = vperm.xlu0 %1782, %v264_v0   ;;  %v275_v63 = vld [vmem:[%s3726_s4 + $0x88] sm:$0xff]  ;;  %v274_v0 = vld [vmem:[%s3726_s4 + $0x80] sm:$0xff]  ;;  %3762 = vst [vmem:[#allocation35_spill] sm:$0xff] %v2358_v57  ;;  %v2499_v9 = vmul.f32 %v2046_v40, %v2398_v54 }
  0x65   : > { %3788 = vst [vmem:[#allocation61_spill] sm:$0xff] %v2499_v9  ;;  %v2521_v9 = vld [vmem:[%s2028_s30 + $0xa8] sm:$0xff] }
  0x67   : > { %693 = vperm.xlu1 %1783, %v267_v1   ;;  %688 = vperm.xlu0 %1782, %v266_v2   ;;  %v2263_v1 = vmul.f32 %v2065_v46, %v2138_v5  ;;  %v2267_v2 = vmul.f32 %v2046_v40, %v2169_v20 }
  0x69   : > { %3746 = vst [vmem:[#allocation19_spill] sm:$0xff] %v2263_v1  ;;  %3747 = vst [vmem:[#allocation20_spill] sm:$0xff] %v2267_v2 }
  0x6b   : > { %703 = vperm.xlu1 %1783, %v269_v3   ;;  %698 = vperm.xlu0 %1782, %v268_v4   ;;  %v2271_v3 = vmul.f32 %v2093_v55, %v2169_v20  ;;  %v328_v4 = vrot.slane %v2216_v42, 7 }
  0x6d   : > { %3748 = vst [vmem:[#allocation21_spill] sm:$0xff] %v2271_v3  ;;  %v2327_v33 = vsel %vm356_vm0, %v327_v39, %v328_v4  ;;  %v2347_v39 = vmul.f32 %v2046_v40, %v2253_v62  ;;  %v2518_v3 = vld [vmem:[%s2028_s30 + $0xa0] sm:$0xff] }
  0x6e   : > { %3756 = vst [vmem:[#allocation29_spill] sm:$0xff] %v2327_v33  ;;  %v2611_v33 = vmul.f32 %v2046_v40, %v2521_v9 }
  0x6f   : > { %713 = vperm.xlu1 %1783, %v271_v11   ;;  %708 = vperm.xlu0 %1782, %v270_v12   ;;  %v329_v11 = vrot.slane %v2235_v52, 7  ;;  %v2289_v12 = vsel %vm356_vm0, %v325_v24, %v326_v35  ;;  %v2306_v24 = vmul.f32 %v2046_v40, %v2235_v52  ;;  %v2313_v35 = vld [vmem:[%s2028_s30 + $0x58] sm:$0xff]  ;;  %3761 = vst [vmem:[#allocation34_spill] sm:$0xff] %v2347_v39 }
  0x70   : > { %v333_v39 = vrot.slane %v2313_v35, 7  ;;  %3809 = vst [vmem:[#allocation82_spill] sm:$0xff] %v2611_v33  ;;  %v2638_v33 = vld [vmem:[%s2028_s30 + $0xd0] sm:$0xff] }
  0x71   : > { %3753 = vst [vmem:[#allocation26_spill] sm:$0xff] %v2306_v24  ;;  %v2339_v56 = vsel %vm356_vm0, %v328_v4, %v329_v11  ;;  %v2362_v4 = vmul.f32 %v2093_v55, %v2253_v62  ;;  %v2374_v38 = vsel %vm356_vm0, %v329_v11, %v330_v14  ;;  %v2393_v11 = vmul.f32 %v2046_v40, %v2313_v35 }
  0x72   : > { %3759 = vst [vmem:[#allocation32_spill] sm:$0xff] %v2339_v56  ;;  %3765 = vst [vmem:[#allocation38_spill] sm:$0xff] %v2374_v38  ;;  %v334_v14 = vrot.slane %v2351_v47, 7  ;;  %v2405_v24 = vmul.f32 %v2093_v55, %v2313_v35  ;;  %v2421_v13 = vsel %vm356_vm0, %v332_v51, %v333_v39  ;;  %v2475_v38 = vmul.f32 %v2065_v46, %v2351_v47 }
  0x73   : > { %723 = vperm.xlu1 %1783, %v273_v25   ;;  %718 = vperm.xlu0 %1782, %v272_v26   ;;  %v2302_v25 = vmul.f32 %v2065_v46, %v2166_v19  ;;  %v2310_v26 = vmul.f32 %v2093_v55, %v2235_v52  ;;  %3763 = vst [vmem:[#allocation36_spill] sm:$0xff] %v2362_v4  ;;  %3769 = vst [vmem:[#allocation42_spill] sm:$0xff] %v2393_v11  ;;  %v348_v45 = vrot.slane %v2638_v33, 7 }
  0x74   : > { %v2382_v4 = vmul.f32 %v2093_v55, %v2250_v61  ;;  %3770 = vst [vmem:[#allocation43_spill] sm:$0xff] %v2405_v24  ;;  %v2417_v11 = vmul.f32 %v2046_v40, %v2298_v17  ;;  %3774 = vst [vmem:[#allocation47_spill] sm:$0xff] %v2421_v13  ;;  %v2429_v24 = vmul.f32 %v2065_v46, %v2298_v17 }
  0x75   : > { %3752 = vst [vmem:[#allocation25_spill] sm:$0xff] %v2302_v25  ;;  %3754 = vst [vmem:[#allocation27_spill] sm:$0xff] %v2310_v26  ;;  %v2378_v26 = vmul.f32 %v2046_v40, %v2250_v61  ;;  %v2409_v25 = vmul.f32 %v2065_v46, %v2313_v35  ;;  %v2471_v13 = vmul.f32 %v2093_v55, %v2351_v47 }
  0x76   : > { %3767 = vst [vmem:[#allocation40_spill] sm:$0xff] %v2382_v4  ;;  %v2401_v4 = vld [vmem:[%s2028_s30 + $0x78] sm:$0xff]  ;;  %3773 = vst [vmem:[#allocation46_spill] sm:$0xff] %v2417_v11 }
  0x77   : > { %733 = vperm.xlu1 %1783, %v275_v63   ;;  %728 = vperm.xlu0 %1782, %v274_v0   ;;  %v277_v63 = vld [vmem:[%s3726_s4 + $0x98] sm:$0xff]  ;;  %v276_v0 = vld [vmem:[%s3726_s4 + $0x90] sm:$0xff]  ;;  %3766 = vst [vmem:[#allocation39_spill] sm:$0xff] %v2378_v26  ;;  %v335_v26 = vrot.slane %v2354_v44, 7  ;;  %3771 = vst [vmem:[#allocation44_spill] sm:$0xff] %v2409_v25 }
  0x78   : > { %3776 = vst [vmem:[#allocation49_spill] sm:$0xff] %v2429_v24  ;;  %v2436_v25 = vld [vmem:[%s2028_s30 + $0x80] sm:$0xff]  ;;  %v336_v24 = vrot.slane %v2398_v54, 7  ;;  %v281_v11 = vld [vmem:[%s3726_s4 + $0xb8] sm:$0xff]  ;;  %3783 = vst [vmem:[#allocation56_spill] sm:$0xff] %v2471_v13  ;;  %v2491_v13 = vmul.f32 %v2093_v55, %v2401_v4 }
  0x79   : > { %3784 = vst [vmem:[#allocation57_spill] sm:$0xff] %v2475_v38  ;;  %v2495_v38 = vmul.f32 %v2065_v46, %v2401_v4  ;;  %v2557_v2 = vmul.f32 %v2093_v55, %v2436_v25  ;;  %v2561_v1 = vmul.f32 %v2065_v46, %v2436_v25 }
  0x7a   : > { %3786 = vst [vmem:[#allocation59_spill] sm:$0xff] %v2491_v13  ;;  %v2511_v13 = vsel %vm356_vm0, %v335_v26, %v336_v24 }
  0x7b   : > { %743 = vperm.xlu1 %1783, %v277_v63   ;;  %738 = vperm.xlu0 %1782, %v276_v0   ;;  %v278_v63 = vld [vmem:[%s3726_s4 + $0xa0] sm:$0xff]  ;;  %v2389_v0 = vmul.f32 %v2065_v46, %v2250_v61  ;;  %3787 = vst [vmem:[#allocation60_spill] sm:$0xff] %v2495_v38  ;;  %3791 = vst [vmem:[#allocation64_spill] sm:$0xff] %v2511_v13  ;;  %v2515_v38 = vmul.f32 %v2065_v46, %v2398_v54 }
  0x7c   : > { %3799 = vst [vmem:[#allocation72_spill] sm:$0xff] %v2557_v2  ;;  %3800 = vst [vmem:[#allocation73_spill] sm:$0xff] %v2561_v1  ;;  %v2578_v1 = vmul.f32 %v2065_v46, %v2487_v10  ;;  %v2581_v2 = vld [vmem:[%s2028_s30 + $0xb8] sm:$0xff] }
  0x7d   : > { %3768 = vst [vmem:[#allocation41_spill] sm:$0xff] %v2389_v0  ;;  %v2413_v0 = vsel %vm356_vm0, %v331_v16, %v332_v51  ;;  %v2433_v16 = vmul.f32 %v2046_v40, %v2354_v44  ;;  %v2443_v51 = vmul.f32 %v2093_v55, %v2354_v44  ;;  %3792 = vst [vmem:[#allocation65_spill] sm:$0xff] %v2515_v38 }
  0x7e   : > { %3772 = vst [vmem:[#allocation45_spill] sm:$0xff] %v2413_v0  ;;  %v2439_v0 = vld [vmem:[%s2028_s30 + $0x88] sm:$0xff]  ;;  %3803 = vst [vmem:[#allocation76_spill] sm:$0xff] %v2578_v1 }
  0x7f   : > { %3777 = vst [vmem:[#allocation50_spill] sm:$0xff] %v2433_v16  ;;  %753 = vperm.xlu1 %1783, %v279_v58   ;;  %748 = vperm.xlu0 %1782, %v278_v63   ;;  %3778 = vst [vmem:[#allocation51_spill] sm:$0xff] %v2443_v51  ;;  %v337_v16 = vrot.slane %v2401_v4, 7  ;;  %v280_v58 = vld [vmem:[%s3726_s4 + $0xb0] sm:$0xff]  ;;  %v2459_v63 = vsel %vm356_vm0, %v334_v14, %v335_v26  ;;  %v2463_v51 = vsel %vm356_vm0, %v333_v39, %v334_v14 }
  0x80   : > { %3780 = vst [vmem:[#allocation53_spill] sm:$0xff] %v2459_v63  ;;  %3781 = vst [vmem:[#allocation54_spill] sm:$0xff] %v2463_v51  ;;  %v2479_v63 = vmul.f32 %v2046_v40, %v2401_v4  ;;  %v338_v39 = vrot.slane %v2436_v25, 7  ;;  %v339_v14 = vrot.slane %v2439_v0, 7  ;;  %v2484_v51 = vld [vmem:[%s2028_s30 + $0x90] sm:$0xff]  ;;  %v2535_v26 = vmul.f32 %v2093_v55, %v2439_v0 }
  0x81   : > { %v2507_v57 = vsel %vm356_vm0, %v336_v24, %v337_v16  ;;  %v2531_v24 = vmul.f32 %v2046_v40, %v2439_v0  ;;  %v340_v38 = vrot.slane %v2484_v51, 7  ;;  %v2599_v1 = vmul.f32 %v2093_v55, %v2484_v51 }
  0x82   : > { %3785 = vst [vmem:[#allocation58_spill] sm:$0xff] %v2479_v63  ;;  %v2503_v63 = vmul.f32 %v2093_v55, %v2398_v54  ;;  %3790 = vst [vmem:[#allocation63_spill] sm:$0xff] %v2507_v57  ;;  %v2541_v13 = vsel %vm356_vm0, %v338_v39, %v339_v14  ;;  %v2545_v57 = vmul.f32 %v2065_v46, %v2439_v0 }
  0x83   : > { %763 = vperm.xlu1 %1783, %v281_v11   ;;  %758 = vperm.xlu0 %1782, %v280_v58   ;;  %v283_v11 = vld [vmem:[%s3726_s4 + $0xc8] sm:$0xff]  ;;  %v282_v58 = vld [vmem:[%s3726_s4 + $0xc0] sm:$0xff]  ;;  %3793 = vst [vmem:[#allocation66_spill] sm:$0xff] %v2531_v24  ;;  %3794 = vst [vmem:[#allocation67_spill] sm:$0xff] %v2535_v26  ;;  %v2549_v24 = vsel %vm356_vm0, %v337_v16, %v338_v39  ;;  %v2553_v26 = vmul.f32 %v2046_v40, %v2436_v25 }
  0x84   : > { %3789 = vst [vmem:[#allocation62_spill] sm:$0xff] %v2503_v63  ;;  %v341_v63 = vrot.slane %v2487_v10, 7  ;;  %3795 = vst [vmem:[#allocation68_spill] sm:$0xff] %v2541_v13  ;;  %v342_v13 = vrot.slane %v2518_v3, 7  ;;  %v2570_v16 = vmul.f32 %v2046_v40, %v2487_v10  ;;  %v2574_v39 = vmul.f32 %v2093_v55, %v2487_v10 }
  0x85   : > { %3796 = vst [vmem:[#allocation69_spill] sm:$0xff] %v2545_v57  ;;  %3797 = vst [vmem:[#allocation70_spill] sm:$0xff] %v2549_v24  ;;  %v343_v57 = vrot.slane %v2521_v9, 7  ;;  %v2607_v24 = vsel %vm356_vm0, %v339_v14, %v340_v38  ;;  %v2634_v14 = vmul.f32 %v2046_v40, %v2518_v3 }
  0x86   : > { %3798 = vst [vmem:[#allocation71_spill] sm:$0xff] %v2553_v26  ;;  %3801 = vst [vmem:[#allocation74_spill] sm:$0xff] %v2570_v16  ;;  %v2591_v16 = vsel %vm356_vm0, %v340_v38, %v341_v63  ;;  %v2603_v26 = vmul.f32 %v2065_v46, %v2484_v51  ;;  %v2630_v38 = vmul.f32 %v2065_v46, %v2521_v9 }
  0x87   : > { %773 = vperm.xlu1 %1783, %v283_v11   ;;  %768 = vperm.xlu0 %1782, %v282_v58   ;;  %3802 = vst [vmem:[#allocation75_spill] sm:$0xff] %v2574_v39  ;;  %v285_v11 = vld [vmem:[%s3726_s4 + $0xd8] sm:$0xff]  ;;  %v284_v58 = vld [vmem:[%s3726_s4 + $0xd0] sm:$0xff]  ;;  %3804 = vst [vmem:[#allocation77_spill] sm:$0xff] %v2591_v16  ;;  %v2595_v39 = vmul.f32 %v2046_v40, %v2484_v51  ;;  %v2615_v16 = vmul.f32 %v2093_v55, %v2521_v9 }
  0x88   : > { %3806 = vst [vmem:[#allocation79_spill] sm:$0xff] %v2599_v1  ;;  %3807 = vst [vmem:[#allocation80_spill] sm:$0xff] %v2603_v26  ;;  %v2622_v1 = vld [vmem:[%s2028_s30 + $0xc8] sm:$0xff]  ;;  %v2626_v26 = vsel %vm356_vm0, %v342_v13, %v343_v57  ;;  %v2645_v49 = vsel %vm356_vm0, %v341_v63, %v342_v13  ;;  %v2663_v13 = vmul.f32 %v2046_v40, %v2581_v2 }
  0x89   : > { %3805 = vst [vmem:[#allocation78_spill] sm:$0xff] %v2595_v39  ;;  %3808 = vst [vmem:[#allocation81_spill] sm:$0xff] %v2607_v24  ;;  %v344_v39 = vrot.slane %v2566_v60, 7  ;;  %v2641_v24 = vld [vmem:[%s2028_s30 + $0xd8] sm:$0xff]  ;;  %v2667_v63 = vmul.f32 %v2093_v55, %v2581_v2  ;;  %s3671_s30 = scalar_lea.hbm %s3727_s5, %s1739_s7 }
  0x8a   : > { %3810 = vst [vmem:[#allocation83_spill] sm:$0xff] %v2615_v16  ;;  %3811 = vst [vmem:[#allocation84_spill] sm:$0xff] %v2626_v26  ;;  %v345_v16 = vrot.slane %v2581_v2, 7  ;;  %v2649_v26 = vmul.f32 %v2093_v55, %v2518_v3 }
  0x8b   : > { %3812 = vst [vmem:[#allocation85_spill] sm:$0xff] %v2630_v38  ;;  %3813 = vst [vmem:[#allocation86_spill] sm:$0xff] %v2634_v14  ;;  %783 = vperm.xlu1 %1783, %v285_v11   ;;  %778 = vperm.xlu0 %1782, %v284_v58   ;;  %v2653_v38 = vmul.f32 %v2065_v46, %v2518_v3  ;;  %v287_v14 = vld [vmem:[%s3726_s4 + $0xe8] sm:$0xff]  ;;  %v286_v11 = vld [vmem:[%s3726_s4 + $0xe0] sm:$0xff]  ;;  %v346_v58 = vrot.slane %v2619_v50, 7 }
  0x8c   : > { %3814 = vst [vmem:[#allocation87_spill] sm:$0xff] %v2645_v49  ;;  %3815 = vst [vmem:[#allocation88_spill] sm:$0xff] %v2649_v26  ;;  %v2673_v26 = vmul.f32 %v2065_v46, %v2581_v2  ;;  %v2677_v49 = vsel %vm356_vm0, %v343_v57, %v344_v39  ;;  %v2683_v56 = vsel %vm356_vm0, %v344_v39, %v345_v16 }
  0x8d   : > { %3816 = vst [vmem:[#allocation89_spill] sm:$0xff] %v2653_v38  ;;  %3817 = vst [vmem:[#allocation90_spill] sm:$0xff] %v2663_v13  ;;  %v347_v38 = vrot.slane %v2622_v1, 7  ;;  %v349_v13 = vrot.slane %v2641_v24, 7  ;;  %v2695_v57 = vmul.f32 %v2065_v46, %v2566_v60  ;;  %v2703_v39 = vmul.f32 %v2093_v55, %v2622_v1 }
  0x8e   : > { %3818 = vst [vmem:[#allocation91_spill] sm:$0xff] %v2667_v63  ;;  %3819 = vst [vmem:[#allocation92_spill] sm:$0xff] %v2673_v26  ;;  %v2687_v63 = vmul.f32 %v2046_v40, %v2566_v60  ;;  %v2699_v26 = vmul.f32 %v2046_v40, %v2622_v1 }
  0x8f   : > { %3820 = vst [vmem:[#allocation93_spill] sm:$0xff] %v2677_v49  ;;  %3823 = vst [vmem:[#allocation96_spill] sm:$0xff] %v2695_v57  ;;  %793 = vperm.xlu1 %1783, %v287_v14   ;;  %788 = vperm.xlu0 %1782, %v286_v11   ;;  %v288_v14 = vld [vmem:[%s3726_s4 + $0xf0] sm:$0xff]  ;;  %v2717_v11 = vsel %vm356_vm0, %v346_v58, %v347_v38  ;;  %v2733_v57 = vmul.f32 %v2065_v46, %v2619_v50 }
  0x90   : > { %3821 = vst [vmem:[#allocation94_spill] sm:$0xff] %v2687_v63  ;;  %3824 = vst [vmem:[#allocation97_spill] sm:$0xff] %v2699_v26  ;;  %v2707_v63 = vmul.f32 %v2065_v46, %v2622_v1  ;;  %v2721_v26 = vsel %vm356_vm0, %v345_v16, %v346_v58  ;;  %v2737_v49 = vsel %vm356_vm0, %v348_v45, %v349_v13 }
  0x91   : > { %3825 = vst [vmem:[#allocation98_spill] sm:$0xff] %v2703_v39  ;;  %3827 = vst [vmem:[#allocation100_spill] sm:$0xff] %v2717_v11  ;;  %v2725_v39 = vmul.f32 %v2046_v40, %v2619_v50  ;;  %v2741_v16 = vmul.f32 %v2046_v40, %v2641_v24  ;;  %v2745_v58 = vsel %vm356_vm0, %v347_v38, %v348_v45  ;;  %v3837_v38 = vrot.slane %v2037_v36, 7 }
  0x92   : > { %3826 = vst [vmem:[#allocation99_spill] sm:$0xff] %v2707_v63  ;;  %v2729_v63 = vmul.f32 %v2093_v55, %v2619_v50  ;;  %3830 = vst [vmem:[#allocation103_spill] sm:$0xff] %v2733_v57  ;;  %v2757_v11 = vmul.f32 %v2046_v40, %v2638_v33  ;;  %v2761_v57 = vmul.f32 %v2093_v55, %v2638_v33 }
  0x93   : > { %3828 = vst [vmem:[#allocation101_spill] sm:$0xff] %v2725_v39  ;;  %3831 = vst [vmem:[#allocation104_spill] sm:$0xff] %v2741_v16  ;;  %v2749_v39 = vmul.f32 %v2093_v55, %v2641_v24  ;;  %803 = vperm.xlu1 %1783, %v289_v43   ;;  %798 = vperm.xlu0 %1782, %v288_v14   ;;  %v2765_v45 = vmul.f32 %v2065_v46, %v2638_v33  ;;  %v582_v16 = vrot.slane %v2138_v5, 1 }
  0x94   : > { %3829 = vst [vmem:[#allocation102_spill] sm:$0xff] %v2729_v63  ;;  %v2753_v63 = vmul.f32 %v2065_v46, %v2641_v24  ;;  %3834 = vst [vmem:[#allocation107_spill] sm:$0xff] %v2757_v11  ;;  %v583_v11 = vrot.slane %v2141_v6, 1  ;;  %v1462_v43 = vsub.s32 2, %v2010_v28  ;;  %v2792_v5 = vmul.f32 %v2065_v46, %v2037_v36 }
  0x95   : > { %3832 = vst [vmem:[#allocation105_spill] sm:$0xff] %v2749_v39  ;;  %3835 = vst [vmem:[#allocation108_spill] sm:$0xff] %v2761_v57  ;;  %v2771_v39 = vsel %vm356_vm0, %v349_v13, %v3837_v38  ;;  %v2784_v57 = vmul.f32 %v2046_v40, %v2037_v36  ;;  %v2788_v13 = vmul.f32 %v2093_v55, %v2037_v36  ;;  %v584_v14 = vrot.slane %v2158_v15, 1 }
  0x96   : > { %3833 = vst [vmem:[#allocation106_spill] sm:$0xff] %v2753_v63  ;;  %3836 = vst [vmem:[#allocation109_spill] sm:$0xff] %v2765_v45  ;;  %v2777_v63 = vmul.f32 %v2093_v55, %v2040_v37  ;;  %v2796_v6 = vmul.f32 %v2046_v40, %v2049_v41  ;;  %v402_v38 = vpop.permute.xlu1 %401  ;;  %v587_v45 = vrot.slane %v2216_v42, 1  ;;  %v2808_v46 = vsel %vm613_vm1, %v582_v16, %v583_v11 }
  0x97   : > { %3838 = vst [vmem:[#allocation110_spill] sm:$0xff] %v2771_v39  ;;  %3840 = vst [vmem:[#allocation112_spill] sm:$0xff] %v2784_v57  ;;  %v585_v39 = vrot.slane %v2166_v19, 1  ;;  %v586_v57 = vrot.slane %v2169_v20, 1  ;;  %v588_v40 = vrot.slane %v2235_v52, 1  ;;  %v2813_v15 = vrot.slane %v2033_v34, %v1462_v43 }
  0x98   : > { %3839 = vst [vmem:[#allocation111_spill] sm:$0xff] %v2777_v63  ;;  %3841 = vst [vmem:[#allocation113_spill] sm:$0xff] %v2788_v13  ;;  %v392_v63 = vpop.permute.xlu0 %391  ;;  %v2804_v13 = vmul.f32 %v2093_v55, %v2049_v41  ;;  %v3846_v19 = vrot.slane %v2145_v8, 1  ;;  %v590_v55 = vrot.slane %v2253_v62, 1  ;;  %v591_v42 = vrot.slane %v2298_v17, 1 }
  0x99   : > { %3842 = vst [vmem:[#allocation114_spill] sm:$0xff] %v2796_v6  ;;  %3844 = vst [vmem:[#allocation116_spill] sm:$0xff] %v2808_v46  ;;  %v589_v6 = vrot.slane %v2250_v61, 1  ;;  %v593_v46 = vrot.slane %v2351_v47, 1  ;;  %v594_v52 = vrot.slane %v2354_v44, 1  ;;  %v595_v61 = vrot.slane %v2398_v54, 1 }
  0x9a   : > { %3843 = vst [vmem:[#allocation115_spill] sm:$0xff] %v2804_v13  ;;  %3845 = vst [vmem:[#allocation117_spill] sm:$0xff] %v2813_v15  ;;  %v2819_v20 = vsel %vm613_vm1, %v3846_v19, %v582_v16  ;;  %v592_v13 = vrot.slane %v2313_v35, 1  ;;  %v407_v34 = vpop.permute.xlu1 %406  ;;  %v2829_v15 = vsel %vm613_vm1, %v584_v14, %v585_v39  ;;  %v2833_v16 = vsel %vm613_vm1, %v583_v11, %v584_v14 }
  0x9b   : > { %v2837_v62 = vsel %vm613_vm1, %v586_v57, %v587_v45  ;;  %v2841_v47 = vsel %vm613_vm1, %v585_v39, %v586_v57  ;;  %v2845_v44 = vsel %vm613_vm1, %v588_v40, %v589_v6  ;;  %v2849_v54 = vsel %vm613_vm1, %v587_v45, %v588_v40 }
  0x9c   : > { %v397_v43 = vpop.permute.xlu0 %396  ;;  %v596_v17 = vrot.slane %v2401_v4, 1  ;;  %v597_v35 = vrot.slane %v2436_v25, 1  ;;  %v2855_v11 = vsel %vm613_vm1, %v590_v55, %v591_v42  ;;  %v2859_v57 = vsel %vm613_vm1, %v589_v6, %v590_v55 }
  0x9d   : > { %3847 = vst [vmem:[#allocation118_spill] sm:$0xff] %v2859_v57  ;;  %v598_v39 = vrot.slane %v2439_v0, 1  ;;  %v599_v14 = vrot.slane %v2484_v51, 1  ;;  %v2865_v45 = vsel %vm613_vm1, %v592_v13, %v593_v46  ;;  %v2869_v4 = vsel %vm613_vm1, %v591_v42, %v592_v13 }
  0x9e   : > { %3848 = vst [vmem:[#allocation119_spill] sm:$0xff] %v2865_v45  ;;  %3849 = vst [vmem:[#allocation120_spill] sm:$0xff] %v2869_v4  ;;  %v2873_v25 = vsel %vm613_vm1, %v594_v52, %v595_v61  ;;  %v2877_v6 = vsel %vm613_vm1, %v593_v46, %v594_v52  ;;  %v417_v40 = vpop.permute.xlu1 %416  ;;  %v600_v51 = vrot.slane %v2487_v10, 1  ;;  %v601_v19 = vrot.slane %v2518_v3, 1 }
  0x9f   : > { %3850 = vst [vmem:[#allocation121_spill] sm:$0xff] %v2873_v25  ;;  %3851 = vst [vmem:[#allocation122_spill] sm:$0xff] %v2877_v6  ;;  %v602_v55 = vrot.slane %v2521_v9, 1  ;;  %v603_v45 = vrot.slane %v2566_v60, 1  ;;  %v551_v13 = vmul.f32 %v402_v38, %v2190_v27  ;;  %v2886_v42 = vsel %vm613_vm1, %v596_v17, %v597_v35 }
  0xa0   : > { %v412_v0 = vpop.permute.xlu0 %411  ;;  %3852 = vst [vmem:[#allocation123_spill] sm:$0xff] %v2886_v42  ;;  %v604_v25 = vrot.slane %v2581_v2, 1  ;;  %v605_v46 = vrot.slane %v2619_v50, 1  ;;  %v2892_v52 = vsel %vm613_vm1, %v595_v61, %v596_v17  ;;  %v2896_v3 = vsel %vm613_vm1, %v598_v39, %v599_v14  ;;  %v3887_v42 = vld [vmem:[#allocation27_spill] sm:$0xff] }
  0xa1   : > { %3853 = vst [vmem:[#allocation124_spill] sm:$0xff] %v2892_v52  ;;  %3854 = vst [vmem:[#allocation125_spill] sm:$0xff] %v2896_v3  ;;  %v606_v60 = vrot.slane %v2622_v1, 1  ;;  %v607_v27 = vrot.slane %v2638_v33, 1  ;;  %v549_v9 = vmul.f32 %v392_v63, %v2208_v32  ;;  %v2903_v10 = vsel %vm613_vm1, %v597_v35, %v598_v39 }
  0xa2   : > { %3855 = vst [vmem:[#allocation126_spill] sm:$0xff] %v2903_v10  ;;  %v608_v50 = vrot.slane %v2641_v24, 1  ;;  %v609_v2 = vrot.slane %v2037_v36, 1  ;;  %v552_v38 = vmul.f32 %v407_v34, %v2239_v53  ;;  %v427_v61 = vpop.permute.xlu1 %426  ;;  %v2910_v3 = vsel %vm613_vm1, %v600_v51, %v601_v19 }
  0xa3   : > { %3856 = vst [vmem:[#allocation127_spill] sm:$0xff] %v2910_v3  ;;  %v2914_v33 = vsel %vm613_vm1, %v599_v14, %v600_v51  ;;  %v2918_v32 = vsel %vm613_vm1, %v602_v55, %v603_v45  ;;  %v880_v1 = vmul.f32 %v2163_v18, %v551_v13  ;;  %v2923_v36 = vsel %vm613_vm1, %v601_v19, %v602_v55 }
  0xa4   : > { %v422_v17 = vpop.permute.xlu0 %421  ;;  %3857 = vst [vmem:[#allocation128_spill] sm:$0xff] %v2914_v33  ;;  %3858 = vst [vmem:[#allocation129_spill] sm:$0xff] %v2918_v32  ;;  %v2927_v53 = vsel %vm613_vm1, %v604_v25, %v605_v46  ;;  %v2931_v24 = vsel %vm613_vm1, %v603_v45, %v604_v25  ;;  %v1148_v63 = vmul.f32 %v2176_v22, %v551_v13  ;;  %v3880_v33 = vld [vmem:[#allocation22_spill] sm:$0xff] }
  0xa5   : > { %3859 = vst [vmem:[#allocation130_spill] sm:$0xff] %v2923_v36  ;;  %3860 = vst [vmem:[#allocation131_spill] sm:$0xff] %v2927_v53  ;;  %v550_v34 = vmul.f32 %v397_v43, %v2243_v59  ;;  %v2937_v35 = vsel %vm613_vm1, %v606_v60, %v607_v27  ;;  %v2941_v39 = vsel %vm613_vm1, %v605_v46, %v606_v60  ;;  %v3875_v53 = vld [vmem:[#allocation19_spill] sm:$0xff] }
  0xa6   : > { %3861 = vst [vmem:[#allocation132_spill] sm:$0xff] %v2931_v24  ;;  %3862 = vst [vmem:[#allocation133_spill] sm:$0xff] %v2937_v35  ;;  %v1402_v14 = vmul.f32 %v2179_v23, %v551_v13  ;;  %v878_v51 = vmul.f32 %v2163_v18, %v549_v9  ;;  %v1400_v19 = vmul.f32 %v2179_v23, %v549_v9  ;;  %v437_v25 = vpop.permute.xlu1 %436  ;;  %v610_v35 = vrot.slane %v2040_v37, 1 }
  0xa7   : > { %3863 = vst [vmem:[#allocation134_spill] sm:$0xff] %v2941_v39  ;;  %v2948_v45 = vsel %vm613_vm1, %v608_v50, %v609_v2  ;;  %v881_v59 = vmul.f32 %v2163_v18, %v552_v38  ;;  %v554_v43 = vmul.f32 %v417_v40, %v2276_v7  ;;  %v2955_v13 = vadd.f32 %v880_v1, %v2173_v21 }
  0xa8   : > { %3864 = vst [vmem:[#allocation135_spill] sm:$0xff] %v2948_v45  ;;  %v432_v55 = vpop.permute.xlu0 %431  ;;  %v1149_v60 = vmul.f32 %v2176_v22, %v552_v38  ;;  %v1403_v9 = vmul.f32 %v2179_v23, %v552_v38  ;;  %v2961_v45 = vsel %vm613_vm1, %v607_v27, %v608_v50  ;;  %v2964_v39 = vadd.f32 %v1148_v63, %v2194_v29  ;;  %v3866_v38 = vld [vmem:[#allocation14_spill] sm:$0xff]  ;;  %v3867_v27 = vld [vmem:[#allocation32_spill] sm:$0xff] }
  0xa9   : > { %3865 = vst [vmem:[#allocation136_spill] sm:$0xff] %v2961_v45  ;;  %v879_v7 = vmul.f32 %v2163_v18, %v550_v34  ;;  %v1401_v37 = vmul.f32 %v2179_v23, %v550_v34  ;;  %v553_v40 = vmul.f32 %v412_v0, %v2289_v12  ;;  %v2970_v21 = vadd.f32 %v1402_v14, %v2198_v30  ;;  %v3868_v45 = vld [vmem:[#allocation15_spill] sm:$0xff]  ;;  %v3871_v0 = vld [vmem:[#allocation16_spill] sm:$0xff] }
  0xaa   : > { %v2973_v1 = vadd.f32 %v878_v51, %v2202_v31  ;;  %v2976_v46 = vadd.f32 %v1400_v19, %v3866_v38  ;;  %v556_v50 = vmul.f32 %v427_v61, %v3867_v27  ;;  %v2980_v29 = vadd.f32 %v881_v59, %v3868_v45  ;;  %v447_v24 = vpop.permute.xlu1 %446  ;;  %v3872_v51 = vld [vmem:[#allocation17_spill] sm:$0xff]  ;;  %v3874_v38 = vld [vmem:[#allocation18_spill] sm:$0xff] }
  0xab   : > { %v883_v63 = vmul.f32 %v2163_v18, %v554_v43  ;;  %v1151_v34 = vmul.f32 %v2176_v22, %v554_v43  ;;  %v3869_v30 = vrot.slane %v2072_v48, 1  ;;  %v2991_v14 = vadd.f32 %v1149_v60, %v3871_v0  ;;  %v3873_v45 = vld [vmem:[#allocation29_spill] sm:$0xff] }
  0xac   : > { %v442_v12 = vpop.permute.xlu0 %441  ;;  %v2994_v61 = vadd.f32 %v1403_v9, %v3872_v51  ;;  %v1405_v19 = vmul.f32 %v2179_v23, %v554_v43  ;;  %v555_v59 = vmul.f32 %v422_v17, %v3873_v45  ;;  %v2999_v27 = vadd.f32 %v879_v7, %v3874_v38  ;;  %v3877_v17 = vld [vmem:[#allocation20_spill] sm:$0xff]  ;;  %v3878_v51 = vld [vmem:[#allocation21_spill] sm:$0xff]  ;;  %v3879_v45 = vld [vmem:[#allocation35_spill] sm:$0xff] }
  0xad   : > { %v2988_v31 = vsel %vm613_vm1, %v610_v35, %v3869_v30  ;;  %v3002_v36 = vadd.f32 %v1401_v37, %v3875_v53  ;;  %v882_v32 = vmul.f32 %v2163_v18, %v553_v40  ;;  %v1150_v30 = vmul.f32 %v2176_v22, %v553_v40 }
  0xae   : > { %3870 = vst [vmem:[#allocation14_spill] sm:$0xff] %v2988_v31  ;;  %v1404_v60 = vmul.f32 %v2179_v23, %v553_v40  ;;  %v885_v0 = vmul.f32 %v2163_v18, %v556_v50  ;;  %v1153_v9 = vmul.f32 %v2176_v22, %v556_v50  ;;  %v3011_v43 = vsel %vm613_vm1, %v609_v2, %v610_v35  ;;  %v457_v31 = vpop.permute.xlu1 %456  ;;  %v3881_v35 = vld [vmem:[#allocation38_spill] sm:$0xff] }
  0xaf   : > { %3876 = vst [vmem:[#allocation32_spill] sm:$0xff] %v3011_v43  ;;  %v3014_v7 = vadd.f32 %v883_v63, %v3877_v17  ;;  %v3017_v53 = vadd.f32 %v1151_v34, %v3878_v51  ;;  %v1407_v37 = vmul.f32 %v2179_v23, %v556_v50  ;;  %v558_v38 = vmul.f32 %v437_v25, %v3879_v45  ;;  %v3882_v63 = vld [vmem:[#allocation23_spill] sm:$0xff]  ;;  %v3883_v34 = vld [vmem:[#allocation24_spill] sm:$0xff]  ;;  %v3884_v45 = vld [vmem:[#allocation25_spill] sm:$0xff] }
  0xb0   : > { %v452_v40 = vpop.permute.xlu0 %451  ;;  %v3022_v3 = vadd.f32 %v1405_v19, %v3880_v33  ;;  %v884_v10 = vmul.f32 %v2163_v18, %v555_v59  ;;  %v1152_v2 = vmul.f32 %v2176_v22, %v555_v59  ;;  %v557_v43 = vmul.f32 %v432_v55, %v3881_v35  ;;  %v3886_v33 = vld [vmem:[#allocation26_spill] sm:$0xff]  ;;  %v3888_v55 = vld [vmem:[#allocation47_spill] sm:$0xff] }
  0xb1   : > { %v3028_v17 = vadd.f32 %v882_v32, %v3882_v63  ;;  %v3031_v51 = vadd.f32 %v1150_v30, %v3883_v34  ;;  %v1406_v50 = vmul.f32 %v2179_v23, %v555_v59  ;;  %v612_v25 = vrot.slane %v2049_v41, 1  ;;  %v3889_v32 = vld [vmem:[#allocation28_spill] sm:$0xff] }
  0xb2   : > { %v3036_v52 = vadd.f32 %v1404_v60, %v3884_v45  ;;  %v3039_v19 = vadd.f32 %v885_v0, %v3886_v33  ;;  %v3042_v6 = vadd.f32 %v1153_v9, %v3887_v42  ;;  %v560_v35 = vmul.f32 %v447_v24, %v3888_v55  ;;  %v467_v34 = vpop.permute.xlu1 %466  ;;  %v3891_v45 = vld [vmem:[#allocation30_spill] sm:$0xff]  ;;  %v3893_v0 = vld [vmem:[#allocation31_spill] sm:$0xff]  ;;  %v3895_v24 = vld [vmem:[#allocation45_spill] sm:$0xff] }
  0xb3   : > { %v3046_v63 = vadd.f32 %v1407_v37, %v3889_v32  ;;  %v887_v30 = vmul.f32 %v2163_v18, %v558_v38  ;;  %v1155_v59 = vmul.f32 %v2176_v22, %v558_v38  ;;  %v1409_v41 = vmul.f32 %v2179_v23, %v558_v38  ;;  %v3896_v37 = vld [vmem:[#allocation33_spill] sm:$0xff] }
  0xb4   : > { %3885 = vst [vmem:[#allocation15_spill] sm:$0xff] %v3036_v52  ;;  %v462_v60 = vpop.permute.xlu0 %461  ;;  %v3052_v52 = vadd.f32 %v884_v10, %v3891_v45  ;;  %v3055_v33 = vadd.f32 %v1152_v2, %v3893_v0  ;;  %v886_v42 = vmul.f32 %v2163_v18, %v557_v43  ;;  %v559_v9 = vmul.f32 %v442_v12, %v3895_v24  ;;  %v3900_v0 = vld [vmem:[#allocation53_spill] sm:$0xff]  ;;  %v3903_v24 = vld [vmem:[#allocation34_spill] sm:$0xff] }
  0xb5   : > { %3890 = vst [vmem:[#allocation16_spill] sm:$0xff] %v3046_v63  ;;  %v3060_v55 = vadd.f32 %v1406_v50, %v3896_v37  ;;  %v1154_v32 = vmul.f32 %v2176_v22, %v557_v43  ;;  %v1408_v63 = vmul.f32 %v2179_v23, %v557_v43  ;;  %v3898_v38 = vrot.slane %v2145_v8, 1  ;;  %v3905_v8 = vld [vmem:[#allocation36_spill] sm:$0xff] }
  0xb6   : > { %3892 = vst [vmem:[#allocation17_spill] sm:$0xff] %v3052_v52  ;;  %3894 = vst [vmem:[#allocation29_spill] sm:$0xff] %v3055_v33  ;;  %v889_v2 = vmul.f32 %v2163_v18, %v560_v35  ;;  %v1157_v45 = vmul.f32 %v2176_v22, %v560_v35  ;;  %v562_v4 = vmul.f32 %v457_v31, %v3900_v0  ;;  %v3901_v12 = vrot.slane %v2072_v48, 1  ;;  %v477_v52 = vpop.permute.xlu1 %476  ;;  %v3909_v31 = vld [vmem:[#allocation39_spill] sm:$0xff] }
  0xb7   : > { %3897 = vst [vmem:[#allocation18_spill] sm:$0xff] %v3060_v55  ;;  %v3068_v10 = vsel %vm613_vm1, %v612_v25, %v3898_v38  ;;  %v3080_v43 = vadd.f32 %v887_v30, %v3903_v24  ;;  %v3083_v37 = vadd.f32 %v1155_v59, %v3905_v8  ;;  %v3906_v38 = vld [vmem:[#allocation37_spill] sm:$0xff]  ;;  %v3908_v55 = vld [vmem:[#allocation54_spill] sm:$0xff]  ;;  %v3090_v0 = vadd.f32 %v886_v42, %v3909_v31  ;;  %v3911_v30 = vld [vmem:[#allocation40_spill] sm:$0xff] }
  0xb8   : > { %3899 = vst [vmem:[#allocation19_spill] sm:$0xff] %v3068_v10  ;;  %v3077_v50 = vsel %vm613_vm1, %v3901_v12, %v612_v25  ;;  %v3086_v10 = vadd.f32 %v1409_v41, %v3906_v38  ;;  %v561_v57 = vmul.f32 %v452_v40, %v3908_v55  ;;  %v472_v33 = vpop.permute.xlu0 %471  ;;  %v1411_v28 = vmul.f32 %v2179_v23, %v560_v35  ;;  %v3913_v59 = vld [vmem:[#allocation41_spill] sm:$0xff]  ;;  %v3915_v40 = vld [vmem:[#allocation63_spill] sm:$0xff]  ;;  %v3916_v8 = vld [vmem:[#allocation42_spill] sm:$0xff] }
  0xb9   : > { %3902 = vst [vmem:[#allocation20_spill] sm:$0xff] %v3077_v50  ;;  %3904 = vst [vmem:[#allocation21_spill] sm:$0xff] %v3080_v43  ;;  %v888_v48 = vmul.f32 %v2163_v18, %v559_v9  ;;  %v1156_v25 = vmul.f32 %v2176_v22, %v559_v9  ;;  %v3096_v12 = vadd.f32 %v1154_v32, %v3911_v30  ;;  %v3918_v42 = vld [vmem:[#allocation43_spill] sm:$0xff]  ;;  %v3928_v43 = vld [vmem:[#allocation50_spill] sm:$0xff] }
  0xba   : > { %3907 = vst [vmem:[#allocation35_spill] sm:$0xff] %v3086_v10  ;;  %3910 = vst [vmem:[#allocation22_spill] sm:$0xff] %v3090_v0  ;;  %v3099_v24 = vadd.f32 %v1408_v63, %v3913_v59  ;;  %v1410_v41 = vmul.f32 %v2179_v23, %v559_v9  ;;  %v564_v55 = vmul.f32 %v467_v34, %v3915_v40  ;;  %v3920_v59 = vld [vmem:[#allocation64_spill] sm:$0xff] }
  0xbb   : > { %3912 = vst [vmem:[#allocation38_spill] sm:$0xff] %v3096_v12  ;;  %v3104_v38 = vadd.f32 %v889_v2, %v3916_v8  ;;  %v3107_v31 = vadd.f32 %v1157_v45, %v3918_v42  ;;  %v891_v35 = vmul.f32 %v2163_v18, %v562_v4  ;;  %v1159_v50 = vmul.f32 %v2176_v22, %v562_v4  ;;  %v3921_v40 = vld [vmem:[#allocation44_spill] sm:$0xff]  ;;  %v3923_v8 = vld [vmem:[#allocation46_spill] sm:$0xff] }
  0xbc   : > { %3914 = vst [vmem:[#allocation23_spill] sm:$0xff] %v3099_v24  ;;  %v1413_v32 = vmul.f32 %v2179_v23, %v562_v4  ;;  %v890_v30 = vmul.f32 %v2163_v18, %v561_v57  ;;  %v1158_v63 = vmul.f32 %v2176_v22, %v561_v57  ;;  %v563_v9 = vmul.f32 %v462_v60, %v3920_v59  ;;  %v487_v24 = vpop.permute.xlu1 %486  ;;  %v482_v34 = vpop.permute.xlu0 %481  ;;  %v3924_v42 = vld [vmem:[#allocation48_spill] sm:$0xff]  ;;  %v3926_v4 = vld [vmem:[#allocation49_spill] sm:$0xff] }
  0xbd   : > { %3917 = vst [vmem:[#allocation24_spill] sm:$0xff] %v3104_v38  ;;  %3919 = vst [vmem:[#allocation25_spill] sm:$0xff] %v3107_v31  ;;  %v3116_v2 = vadd.f32 %v1411_v28, %v3921_v40  ;;  %v3119_v45 = vadd.f32 %v888_v48, %v3923_v8  ;;  %v3122_v38 = vadd.f32 %v1156_v25, %v3924_v42  ;;  %v3925_v31 = vld [vmem:[#allocation68_spill] sm:$0xff]  ;;  %v3930_v40 = vld [vmem:[#allocation51_spill] sm:$0xff] }
  0xbe   : > { %v566_v10 = vmul.f32 %v477_v52, %v3925_v31  ;;  %v3126_v0 = vadd.f32 %v1410_v41, %v3926_v4  ;;  %v1412_v12 = vmul.f32 %v2179_v23, %v561_v57  ;;  %v893_v60 = vmul.f32 %v2163_v18, %v564_v55  ;;  %v3932_v8 = vld [vmem:[#allocation70_spill] sm:$0xff]  ;;  %v3933_v52 = vld [vmem:[#allocation52_spill] sm:$0xff]  ;;  %v3935_v41 = vld [vmem:[#allocation55_spill] sm:$0xff] }
  0xbf   : > { %3922 = vst [vmem:[#allocation26_spill] sm:$0xff] %v3116_v2  ;;  %v1161_v59 = vmul.f32 %v2176_v22, %v564_v55  ;;  %v3132_v28 = vadd.f32 %v891_v35, %v3928_v43  ;;  %v3135_v48 = vadd.f32 %v1159_v50, %v3930_v40  ;;  %v1415_v25 = vmul.f32 %v2179_v23, %v564_v55  ;;  %v3937_v57 = vld [vmem:[#allocation56_spill] sm:$0xff] }
  0xc0   : > { %3927 = vst [vmem:[#allocation27_spill] sm:$0xff] %v3126_v0  ;;  %v565_v42 = vmul.f32 %v472_v33, %v3932_v8  ;;  %v3140_v31 = vadd.f32 %v1413_v32, %v3933_v52  ;;  %v3143_v4 = vadd.f32 %v890_v30, %v3935_v41  ;;  %v3146_v0 = vadd.f32 %v1158_v63, %v3937_v57  ;;  %v497_v43 = vpop.permute.xlu1 %496  ;;  %v492_v35 = vpop.permute.xlu0 %491  ;;  %v3939_v33 = vld [vmem:[#allocation77_spill] sm:$0xff]  ;;  %v3942_v30 = vld [vmem:[#allocation58_spill] sm:$0xff]  ;;  %v3944_v63 = vld [vmem:[#allocation59_spill] sm:$0xff] }
  0xc1   : > { %3929 = vst [vmem:[#allocation47_spill] sm:$0xff] %v3132_v28  ;;  %3931 = vst [vmem:[#allocation28_spill] sm:$0xff] %v3135_v48  ;;  %v892_v2 = vmul.f32 %v2163_v18, %v563_v9  ;;  %v1160_v50 = vmul.f32 %v2176_v22, %v563_v9  ;;  %v1414_v40 = vmul.f32 %v2179_v23, %v563_v9  ;;  %v3940_v32 = vld [vmem:[#allocation57_spill] sm:$0xff] }
  0xc2   : > { %3934 = vst [vmem:[#allocation30_spill] sm:$0xff] %v3140_v31  ;;  %3936 = vst [vmem:[#allocation31_spill] sm:$0xff] %v3143_v4  ;;  %v895_v55 = vmul.f32 %v2163_v18, %v566_v10  ;;  %v568_v8 = vmul.f32 %v487_v24, %v3939_v33  ;;  %v3154_v52 = vadd.f32 %v1412_v12, %v3940_v32  ;;  %v3946_v4 = vld [vmem:[#allocation60_spill] sm:$0xff]  ;;  %v3948_v28 = vld [vmem:[#allocation81_spill] sm:$0xff] }
  0xc3   : > { %3938 = vst [vmem:[#allocation45_spill] sm:$0xff] %v3146_v0  ;;  %v3157_v41 = vadd.f32 %v893_v60, %v3942_v30  ;;  %v3160_v57 = vadd.f32 %v1161_v59, %v3944_v63  ;;  %v1163_v31 = vmul.f32 %v2176_v22, %v566_v10  ;;  %v3164_v0 = vadd.f32 %v1415_v25, %v3946_v4  ;;  %v3949_v33 = vld [vmem:[#allocation61_spill] sm:$0xff]  ;;  %v3951_v59 = vld [vmem:[#allocation84_spill] sm:$0xff] }
  0xc4   : > { %3941 = vst [vmem:[#allocation33_spill] sm:$0xff] %v3154_v52  ;;  %v1417_v9 = vmul.f32 %v2179_v23, %v566_v10  ;;  %v894_v48 = vmul.f32 %v2163_v18, %v565_v42  ;;  %v567_v24 = vmul.f32 %v482_v34, %v3948_v28  ;;  %v3170_v12 = vadd.f32 %v892_v2, %v3949_v33  ;;  %v507_v63 = vpop.permute.xlu1 %506  ;;  %v502_v52 = vpop.permute.xlu0 %501  ;;  %v3953_v4 = vld [vmem:[#allocation65_spill] sm:$0xff]  ;;  %v3957_v2 = vld [vmem:[#allocation67_spill] sm:$0xff] }
  0xc5   : > { %3943 = vst [vmem:[#allocation53_spill] sm:$0xff] %v3157_v41  ;;  %3945 = vst [vmem:[#allocation34_spill] sm:$0xff] %v3160_v57  ;;  %v1162_v60 = vmul.f32 %v2176_v22, %v565_v42  ;;  %v1416_v32 = vmul.f32 %v2179_v23, %v565_v42  ;;  %v570_v30 = vmul.f32 %v497_v43, %v3951_v59  ;;  %v3952_v57 = vld [vmem:[#allocation62_spill] sm:$0xff]  ;;  %v3958_v33 = vld [vmem:[#allocation87_spill] sm:$0xff] }
  0xc6   : > { %3947 = vst [vmem:[#allocation36_spill] sm:$0xff] %v3164_v0  ;;  %3950 = vst [vmem:[#allocation37_spill] sm:$0xff] %v3170_v12  ;;  %v3176_v25 = vadd.f32 %v1160_v50, %v3952_v57  ;;  %v3179_v10 = vadd.f32 %v1414_v40, %v3953_v4  ;;  %v3955_v0 = vld [vmem:[#allocation66_spill] sm:$0xff]  ;;  %v897_v34 = vmul.f32 %v2163_v18, %v568_v8  ;;  %v3959_v12 = vld [vmem:[#allocation69_spill] sm:$0xff] }
  0xc7   : > { %v3182_v41 = vadd.f32 %v895_v55, %v3955_v0  ;;  %v3186_v28 = vadd.f32 %v1163_v31, %v3957_v2  ;;  %v1165_v42 = vmul.f32 %v2176_v22, %v568_v8  ;;  %v1419_v43 = vmul.f32 %v2179_v23, %v568_v8  ;;  %v3961_v57 = vld [vmem:[#allocation71_spill] sm:$0xff]  ;;  %v3963_v4 = vld [vmem:[#allocation72_spill] sm:$0xff]  ;;  %v3965_v31 = vld [vmem:[#allocation73_spill] sm:$0xff] }
  0xc8   : > { %3954 = vst [vmem:[#allocation54_spill] sm:$0xff] %v3179_v10  ;;  %v569_v59 = vmul.f32 %v492_v35, %v3958_v33  ;;  %v3192_v50 = vadd.f32 %v1417_v9, %v3959_v12  ;;  %v3195_v40 = vadd.f32 %v894_v48, %v3961_v57  ;;  %v896_v0 = vmul.f32 %v2163_v18, %v567_v24  ;;  %v517_v33 = vpop.permute.xlu1 %516  ;;  %v512_v9 = vpop.permute.xlu0 %511  ;;  %v3967_v12 = vld [vmem:[#allocation74_spill] sm:$0xff] }
  0xc9   : > { %3956 = vst [vmem:[#allocation39_spill] sm:$0xff] %v3182_v41  ;;  %v1164_v55 = vmul.f32 %v2176_v22, %v567_v24  ;;  %v3200_v10 = vadd.f32 %v1162_v60, %v3963_v4  ;;  %v3203_v2 = vadd.f32 %v1416_v32, %v3965_v31  ;;  %v1418_v8 = vmul.f32 %v2179_v23, %v567_v24  ;;  %v3969_v60 = vld [vmem:[#allocation75_spill] sm:$0xff]  ;;  %v3971_v32 = vld [vmem:[#allocation76_spill] sm:$0xff] }
  0xca   : > { %3960 = vst [vmem:[#allocation40_spill] sm:$0xff] %v3192_v50  ;;  %3962 = vst [vmem:[#allocation41_spill] sm:$0xff] %v3195_v40  ;;  %v899_v35 = vmul.f32 %v2163_v18, %v570_v30  ;;  %v3208_v50 = vadd.f32 %v897_v34, %v3967_v12  ;;  %v1167_v48 = vmul.f32 %v2176_v22, %v570_v30  ;;  %v3975_v12 = vld [vmem:[#allocation79_spill] sm:$0xff] }
  0xcb   : > { %3964 = vst [vmem:[#allocation63_spill] sm:$0xff] %v3200_v10  ;;  %3966 = vst [vmem:[#allocation42_spill] sm:$0xff] %v3203_v2  ;;  %v1421_v57 = vmul.f32 %v2179_v23, %v570_v30  ;;  %v572_v40 = vmul.f32 %v507_v63, %v2683_v56  ;;  %v3214_v4 = vadd.f32 %v1165_v42, %v3969_v60  ;;  %v3973_v10 = vld [vmem:[#allocation78_spill] sm:$0xff]  ;;  %v3977_v63 = vld [vmem:[#allocation80_spill] sm:$0xff] }
  0xcc   : > { %3968 = vst [vmem:[#allocation43_spill] sm:$0xff] %v3208_v50  ;;  %v3217_v31 = vadd.f32 %v1419_v43, %v3971_v32  ;;  %v898_v24 = vmul.f32 %v2163_v18, %v569_v59  ;;  %v3221_v2 = vmul.f32 %v512_v9, %v2721_v26  ;;  %v3224_v34 = vadd.f32 %v896_v0, %v3973_v10  ;;  %v3979_v43 = vld [vmem:[#allocation82_spill] sm:$0xff]  ;;  %v3981_v32 = vld [vmem:[#allocation93_spill] sm:$0xff]  ;;  %v527_v10 = vpop.permute.xlu1 %526  ;;  %v522_v0 = vpop.permute.xlu0 %521  ;;  %v3982_v9 = vld [vmem:[#allocation83_spill] sm:$0xff] }
  0xcd   : > { %3970 = vst [vmem:[#allocation64_spill] sm:$0xff] %v3214_v4  ;;  %v3227_v50 = vadd.f32 %v1164_v55, %v3975_v12  ;;  %v1166_v30 = vmul.f32 %v2176_v22, %v569_v59  ;;  %v1420_v56 = vmul.f32 %v2179_v23, %v569_v59  ;;  %v3232_v42 = vadd.f32 %v1418_v8, %v3977_v63  ;;  %v3984_v12 = vld [vmem:[#allocation85_spill] sm:$0xff]  ;;  %v3986_v63 = vld [vmem:[#allocation86_spill] sm:$0xff] }
  0xce   : > { %3972 = vst [vmem:[#allocation44_spill] sm:$0xff] %v3217_v31  ;;  %3974 = vst [vmem:[#allocation46_spill] sm:$0xff] %v3224_v34  ;;  %v3235_v60 = vadd.f32 %v899_v35, %v3979_v43  ;;  %v571_v31 = vmul.f32 %v502_v52, %v3981_v32  ;;  %v1424_v26 = vmul.f32 %v2179_v23, %v3221_v2  ;;  %v3988_v43 = vld [vmem:[#allocation103_spill] sm:$0xff]  ;;  %v4004_v4 = vld [vmem:[#allocation110_spill] sm:$0xff] }
  0xcf   : > { %3976 = vst [vmem:[#allocation48_spill] sm:$0xff] %v3227_v50  ;;  %3978 = vst [vmem:[#allocation68_spill] sm:$0xff] %v3232_v42  ;;  %v3241_v55 = vadd.f32 %v1167_v48, %v3982_v9  ;;  %v3244_v34 = vadd.f32 %v1421_v57, %v3984_v12  ;;  %v901_v59 = vmul.f32 %v2163_v18, %v572_v40  ;;  %v3992_v9 = vld [vmem:[#allocation89_spill] sm:$0xff] }
  0xd0   : > { %3980 = vst [vmem:[#allocation49_spill] sm:$0xff] %v3235_v60  ;;  %v576_v8 = vmul.f32 %v527_v10, %v2737_v49  ;;  %v3249_v35 = vadd.f32 %v898_v24, %v3986_v63  ;;  %v1169_v52 = vmul.f32 %v2176_v22, %v572_v40  ;;  %v3253_v32 = vadd.f32 %v1424_v26, %v3988_v43  ;;  %v3990_v60 = vld [vmem:[#allocation88_spill] sm:$0xff]  ;;  %v537_v43 = vpop.permute.xlu1 %536 }
  0xd1   : > { %3983 = vst [vmem:[#allocation50_spill] sm:$0xff] %v3241_v55  ;;  %3985 = vst [vmem:[#allocation51_spill] sm:$0xff] %v3244_v34  ;;  %v575_v42 = vmul.f32 %v522_v0, %v2745_v58  ;;  %v3257_v48 = vadd.f32 %v1166_v30, %v3990_v60  ;;  %v3260_v57 = vadd.f32 %v1420_v56, %v3992_v9  ;;  %v532_v58 = vpop.permute.xlu0 %531  ;;  %v3994_v0 = vld [vmem:[#allocation90_spill] sm:$0xff]  ;;  %v4002_v55 = vld [vmem:[#allocation109_spill] sm:$0xff] }
  0xd2   : > { %3987 = vst [vmem:[#allocation70_spill] sm:$0xff] %v3249_v35  ;;  %3989 = vst [vmem:[#allocation52_spill] sm:$0xff] %v3253_v32  ;;  %v1423_v12 = vmul.f32 %v2179_v23, %v572_v40  ;;  %v1427_v49 = vmul.f32 %v2179_v23, %v576_v8  ;;  %v900_v24 = vmul.f32 %v2163_v18, %v571_v31  ;;  %v3996_v60 = vld [vmem:[#allocation106_spill] sm:$0xff] }
  0xd3   : > { %3991 = vst [vmem:[#allocation55_spill] sm:$0xff] %v3257_v48  ;;  %3993 = vst [vmem:[#allocation56_spill] sm:$0xff] %v3260_v57  ;;  %v1168_v10 = vmul.f32 %v2176_v22, %v571_v31  ;;  %v904_v63 = vmul.f32 %v2163_v18, %v575_v42  ;;  %v1426_v26 = vmul.f32 %v2179_v23, %v575_v42  ;;  %v3998_v40 = vld [vmem:[#allocation6_spill] sm:$0xff]  ;;  %v3999_v57 = vld [vmem:[#allocation91_spill] sm:$0xff] }
  0xd4   : > { %v3269_v30 = vadd.f32 %v901_v59, %v3994_v0  ;;  %v1422_v56 = vmul.f32 %v2179_v23, %v571_v31  ;;  %v3273_v9 = vadd.f32 %v1427_v49, %v3996_v60  ;;  %v578_v32 = vmul.f32 %v537_v43, %v3998_v40  ;;  %v4000_v48 = vld [vmem:[#allocation107_spill] sm:$0xff]  ;;  %v4005_v59 = vld [vmem:[#allocation100_spill] sm:$0xff] }
  0xd5   : > { %v3277_v34 = vadd.f32 %v1169_v52, %v3999_v57  ;;  %v3280_v35 = vadd.f32 %v904_v63, %v4000_v48  ;;  %v3283_v50 = vadd.f32 %v1426_v26, %v4002_v55  ;;  %v577_v41 = vmul.f32 %v532_v58, %v4004_v4  ;;  %v4006_v43 = vld [vmem:[#allocation92_spill] sm:$0xff]  ;;  %v547_v57 = vpop.permute.xlu1 %546  ;;  %v542_v63 = vpop.permute.xlu0 %541  ;;  %v4008_v4 = vld [vmem:[#allocation7_spill] sm:$0xff] }
  0xd6   : > { %3995 = vst [vmem:[#allocation77_spill] sm:$0xff] %v3269_v30  ;;  %3997 = vst [vmem:[#allocation57_spill] sm:$0xff] %v3273_v9  ;;  %v574_v0 = vmul.f32 %v517_v33, %v4005_v59  ;;  %v907_v31 = vmul.f32 %v2163_v18, %v578_v32  ;;  %v1175_v49 = vmul.f32 %v2176_v22, %v578_v32  ;;  %v4009_v33 = vld [vmem:[#allocation111_spill] sm:$0xff]  ;;  %v4010_v59 = vld [vmem:[#allocation8_spill] sm:$0xff] }
  0xd7   : > { %4001 = vst [vmem:[#allocation58_spill] sm:$0xff] %v3280_v35  ;;  %4003 = vst [vmem:[#allocation59_spill] sm:$0xff] %v3283_v50  ;;  %v1429_v60 = vmul.f32 %v2179_v23, %v578_v32  ;;  %v3291_v40 = vadd.f32 %v1423_v12, %v4006_v43  ;;  %v906_v52 = vmul.f32 %v2163_v18, %v577_v41  ;;  %v4012_v32 = vld [vmem:[#allocation9_spill] sm:$0xff]  ;;  %v4013_v43 = vld [vmem:[#allocation112_spill] sm:$0xff] }
  0xd8   : > { %v1174_v48 = vmul.f32 %v2176_v22, %v577_v41  ;;  %v1428_v55 = vmul.f32 %v2179_v23, %v577_v41  ;;  %v3297_v26 = vadd.f32 %v907_v31, %v4008_v4  ;;  %v3300_v58 = vadd.f32 %v1175_v49, %v4009_v33  ;;  %v4015_v35 = vld [vmem:[#allocation113_spill] sm:$0xff]  ;;  %v4018_v30 = vld [vmem:[#allocation10_spill] sm:$0xff] }
  0xd9   : > { %4007 = vst [vmem:[#allocation60_spill] sm:$0xff] %v3291_v40  ;;  %v3303_v50 = vadd.f32 %v1429_v60, %v4010_v59  ;;  %v580_v12 = vmul.f32 %v547_v57, %v4012_v32  ;;  %v3307_v9 = vadd.f32 %v906_v52, %v4013_v43  ;;  %v579_v31 = vmul.f32 %v542_v63, %v4018_v30  ;;  %v4019_v30 = vld [vmem:[#allocation114_spill] sm:$0xff]  ;;  %v4021_v59 = vld [vmem:[#allocation115_spill] sm:$0xff]  ;;  %v4023_v43 = vld [vmem:[#allocation116_spill] sm:$0xff] }
  0xda   : > { %v3310_v40 = vadd.f32 %v1174_v48, %v4015_v35  ;;  %v3313_v41 = vadd.f32 %v1428_v55, %v2792_v5  ;;  %v903_v4 = vmul.f32 %v2163_v18, %v574_v0  ;;  %v1171_v49 = vmul.f32 %v2176_v22, %v574_v0  ;;  %v654_v48 = vpop.permute.xlu1 %653  ;;  %v649_v55 = vpop.permute.xlu0 %648 }
  0xdb   : > { %4011 = vst [vmem:[#allocation81_spill] sm:$0xff] %v3303_v50  ;;  %4014 = vst [vmem:[#allocation61_spill] sm:$0xff] %v3307_v9  ;;  %v909_v60 = vmul.f32 %v2163_v18, %v580_v12  ;;  %v1177_v33 = vmul.f32 %v2176_v22, %v580_v12  ;;  %v1425_v57 = vmul.f32 %v2179_v23, %v574_v0 }
  0xdc   : > { %4016 = vst [vmem:[#allocation84_spill] sm:$0xff] %v3310_v40  ;;  %4017 = vst [vmem:[#allocation62_spill] sm:$0xff] %v3313_v41  ;;  %v902_v52 = vmul.f32 %v2163_v18, %v3221_v2  ;;  %v908_v35 = vmul.f32 %v2163_v18, %v579_v31  ;;  %v1176_v5 = vmul.f32 %v2176_v22, %v579_v31  ;;  %v4024_v40 = vld [vmem:[#allocation11_spill] sm:$0xff]  ;;  %v4026_v31 = vld [vmem:[#allocation12_spill] sm:$0xff] }
  0xdd   : > { %v3326_v63 = vadd.f32 %v909_v60, %v4019_v30  ;;  %v3329_v32 = vadd.f32 %v1177_v33, %v4021_v59  ;;  %v807_v41 = vmul.f32 %v654_v48, %v4023_v43  ;;  %v806_v12 = vmul.f32 %v649_v55, %v2819_v20  ;;  %v4028_v30 = vld [vmem:[#allocation13_spill] sm:$0xff]  ;;  %v4029_v55 = vld [vmem:[#allocation94_spill] sm:$0xff] }
  0xde   : > { %v1170_v23 = vmul.f32 %v2176_v22, %v3221_v2  ;;  %v905_v0 = vmul.f32 %v2163_v18, %v576_v8  ;;  %v3337_v9 = vadd.f32 %v908_v35, %v4024_v40  ;;  %v3340_v50 = vadd.f32 %v1176_v5, %v4026_v31  ;;  %v4030_v2 = vld [vmem:[#allocation95_spill] sm:$0xff]  ;;  %v4031_v40 = vld [vmem:[#allocation96_spill] sm:$0xff]  ;;  %v4032_v43 = vld [vmem:[#allocation97_spill] sm:$0xff]  ;;  %v664_v31 = vpop.permute.xlu1 %663 }
  0xdf   : > { %4020 = vst [vmem:[#allocation65_spill] sm:$0xff] %v3326_v63  ;;  %4022 = vst [vmem:[#allocation66_spill] sm:$0xff] %v3329_v32  ;;  %v1173_v60 = vmul.f32 %v2176_v22, %v576_v8  ;;  %v1172_v33 = vmul.f32 %v2176_v22, %v575_v42  ;;  %v947_v48 = vmul.f32 %v4028_v30, %v807_v41  ;;  %v659_v8 = vpop.permute.xlu0 %658  ;;  %v4034_v42 = vld [vmem:[#allocation99_spill] sm:$0xff] }
  0xe0   : > { %4025 = vst [vmem:[#allocation67_spill] sm:$0xff] %v3337_v9  ;;  %4027 = vst [vmem:[#allocation87_spill] sm:$0xff] %v3340_v50  ;;  %v946_v20 = vmul.f32 %v4028_v30, %v806_v12  ;;  %v3347_v59 = vadd.f32 %v900_v24, %v4029_v55  ;;  %v3350_v18 = vadd.f32 %v1168_v10, %v4030_v2  ;;  %v4033_v50 = vld [vmem:[#allocation98_spill] sm:$0xff]  ;;  %v4035_v24 = vld [vmem:[#allocation101_spill] sm:$0xff] }
  0xe1   : > { %v3353_v35 = vadd.f32 %v1422_v56, %v4031_v40  ;;  %v3356_v5 = vadd.f32 %v903_v4, %v4032_v43  ;;  %v3359_v22 = vadd.f32 %v1171_v49, %v4033_v50  ;;  %v3362_v9 = vadd.f32 %v1425_v57, %v4034_v42  ;;  %v4036_v10 = vld [vmem:[#allocation117_spill] sm:$0xff]  ;;  %v3372_v56 = vld [vmem:[%s3723_s1 + $0x8] ss:$0 sm:$0xff]  ;;  %v4037_v4 = vld [vmem:[#allocation102_spill] sm:$0xff] }
  0xe2   : > { %v3365_v55 = vadd.f32 %v902_v52, %v4035_v24  ;;  %v1465_v2 = vmul.f32 %v4036_v10, %v807_v41  ;;  %v3375_v40 = vadd.f32 %v1170_v23, %v4037_v4  ;;  %v979_v50 = vadd.f32 %v947_v48, %v2999_v27  ;;  %v4038_v43 = vld [vmem:[#allocation104_spill] sm:$0xff]  ;;  %v4039_v42 = vld [vmem:[#allocation105_spill] sm:$0xff]  ;;  %v3392_v23 = vld [vmem:[%s3724_s2] ss:$0 sm:$0xff]  ;;  %v674_v48 = vpop.permute.xlu1 %673 }
  0xe3   : > { %v809_v49 = vmul.f32 %v664_v31, %v2829_v15  ;;  %v808_v57 = vmul.f32 %v659_v8, %v2833_v16  ;;  %v3381_v52 = vadd.f32 %v905_v0, %v4038_v43  ;;  %v3384_v41 = vadd.f32 %v1173_v60, %v4039_v42  ;;  %v4040_v24 = vld [vmem:[#allocation108_spill] sm:$0xff] }
  0xe4   : > { %v3387_v32 = vadd.f32 %v1172_v33, %v4040_v24  ;;  %v978_v27 = vadd.f32 %v946_v20, %v2973_v1  ;;  %v1464_v15 = vmul.f32 %v4036_v10, %v806_v12  ;;  %v669_v33 = vpop.permute.xlu0 %668  ;;  %v1495_v31 = vadd.f32 %v1465_v2, %v3002_v36 }
  0xe5   : > { %v949_v16 = vmul.f32 %v4028_v30, %v809_v49  ;;  %v1213_v0 = vmul.f32 %v3372_v56, %v809_v49  ;;  %v948_v60 = vmul.f32 %v4028_v30, %v808_v57  ;;  %v1212_v8 = vmul.f32 %v3372_v56, %v808_v57 }
  0xe6   : > { %v811_v4 = vmul.f32 %v674_v48, %v2837_v62  ;;  %v810_v1 = vmul.f32 %v669_v33, %v2841_v47  ;;  %v1017_v12 = vadd.f32 %v3392_v23, %v979_v50  ;;  %v1467_v42 = vmul.f32 %v4036_v10, %v809_v49 }
  0xe7   : > { %v981_v20 = vadd.f32 %v949_v16, %v2980_v29  ;;  %v1243_v43 = vadd.f32 %v1213_v0, %v2991_v14  ;;  %v1016_v24 = vadd.f32 %v3392_v23, %v978_v27  ;;  %v1242_v63 = vadd.f32 %v1212_v8, %v2964_v39  ;;  %v684_v29 = vpop.permute.xlu1 %683 }
  0xe8   : > { %v951_v36 = vmul.f32 %v4028_v30, %v811_v4  ;;  %v1215_v2 = vmul.f32 %v3372_v56, %v811_v4  ;;  %v980_v47 = vadd.f32 %v948_v60, %v2955_v13  ;;  %v1466_v50 = vmul.f32 %v4036_v10, %v808_v57  ;;  %v679_v16 = vpop.permute.xlu0 %678 }
  0xe9   : > { %v1019_v62 = vadd.f32 %v3392_v23, %v981_v20  ;;  %v1273_v48 = vadd.f32 %v1243_v43, %v1017_v12  ;;  %v1272_v14 = vadd.f32 %v1242_v63, %v1016_v24  ;;  %v950_v39 = vmul.f32 %v4028_v30, %v810_v1 }
  0xea   : > { %v983_v49 = vadd.f32 %v951_v36, %v3014_v7  ;;  %v1245_v27 = vadd.f32 %v1215_v2, %v3017_v53  ;;  %v1494_v0 = vadd.f32 %v1464_v15, %v2976_v46  ;;  %v1497_v33 = vadd.f32 %v1467_v42, %v2994_v61 }
  0xeb   : > { %1617 = vst [vmem:[%s3421_s6 + $0x8] sm:$0xff] %v1273_v48  ;;  %v1214_v13 = vmul.f32 %v3372_v56, %v810_v1  ;;  %v813_v57 = vmul.f32 %v684_v29, %v2845_v44  ;;  %1616 = vst [vmem:[%s3421_s6] sm:$0xff] %v1272_v14  ;;  %v1469_v7 = vmul.f32 %v4036_v10, %v811_v4  ;;  %v694_v12 = vpop.permute.xlu1 %693 }
  0xec   : > { %v1275_v63 = vadd.f32 %v1245_v27, %v1019_v62  ;;  %v982_v53 = vadd.f32 %v950_v39, %v3028_v17  ;;  %v812_v60 = vmul.f32 %v679_v16, %v2849_v54  ;;  %v1018_v46 = vadd.f32 %v3392_v23, %v980_v47  ;;  %v689_v20 = vpop.permute.xlu0 %688  ;;  %v4042_v16 = vld [vmem:[#allocation17_spill] sm:$0xff] }
  0xed   : > { %v1244_v61 = vadd.f32 %v1214_v13, %v3031_v51  ;;  %v953_v15 = vmul.f32 %v4028_v30, %v813_v57  ;;  %v1217_v8 = vmul.f32 %v3372_v56, %v813_v57  ;;  %v1496_v44 = vadd.f32 %v1466_v50, %v2970_v21  ;;  %v4041_v50 = vld [vmem:[#allocation29_spill] sm:$0xff] }
  0xee   : > { %v1021_v43 = vadd.f32 %v3392_v23, %v983_v49  ;;  %v1525_v4 = vadd.f32 %v1495_v31, %v1275_v63  ;;  %v952_v17 = vmul.f32 %v4028_v30, %v812_v60  ;;  %v1216_v51 = vmul.f32 %v3372_v56, %v812_v60 }
  0xef   : > { %v1274_v42 = vadd.f32 %v1244_v61, %v1018_v46  ;;  %v985_v54 = vadd.f32 %v953_v15, %v3039_v19  ;;  %v1247_v24 = vadd.f32 %v1217_v8, %v3042_v6  ;;  %v1499_v36 = vadd.f32 %v1469_v7, %v3022_v3  ;;  %v704_v6 = vpop.permute.xlu1 %703  ;;  %v4044_v7 = vld [vmem:[#allocation119_spill] sm:$0xff]  ;;  %v4045_v46 = vld [vmem:[#allocation120_spill] sm:$0xff]  ;;  %v4046_v15 = vld [vmem:[#allocation21_spill] sm:$0xff] }
  0xf0   : > { %1619 = vst [vmem:[%s3421_s6 + $0x18] sm:$0xff] %v1525_v4  ;;  %v1020_v2 = vadd.f32 %v3392_v23, %v982_v53  ;;  %v1468_v21 = vmul.f32 %v4036_v10, %v810_v1  ;;  %v815_v62 = vmul.f32 %v694_v12, %v2855_v11  ;;  %v1471_v47 = vmul.f32 %v4036_v10, %v813_v57  ;;  %v699_v29 = vpop.permute.xlu0 %698 }
  0xf1   : > { %v1524_v31 = vadd.f32 %v1494_v0, %v1274_v42  ;;  %v1277_v48 = vadd.f32 %v1247_v24, %v1021_v43  ;;  %v1246_v19 = vadd.f32 %v1216_v51, %v4041_v50  ;;  %v984_v14 = vadd.f32 %v952_v17, %v4042_v16  ;;  %v4043_v0 = vld [vmem:[#allocation118_spill] sm:$0xff]  ;;  %v4048_v24 = vld [vmem:[#allocation16_spill] sm:$0xff] }
  0xf2   : > { %v1470_v3 = vmul.f32 %v4036_v10, %v812_v60  ;;  %v955_v49 = vmul.f32 %v4028_v30, %v815_v62  ;;  %v1219_v27 = vmul.f32 %v3372_v56, %v815_v62  ;;  %v1023_v11 = vadd.f32 %v3392_v23, %v985_v54 }
  0xf3   : > { %1618 = vst [vmem:[%s3421_s6 + $0x10] sm:$0xff] %v1524_v31  ;;  %v1527_v1 = vadd.f32 %v1497_v33, %v1277_v48  ;;  %v1276_v39 = vadd.f32 %v1246_v19, %v1020_v2  ;;  %v814_v13 = vmul.f32 %v689_v20, %v4043_v0  ;;  %v1473_v63 = vmul.f32 %v4036_v10, %v815_v62  ;;  %v714_v43 = vpop.permute.xlu1 %713  ;;  %v4047_v20 = vld [vmem:[#allocation15_spill] sm:$0xff]  ;;  %v4049_v2 = vld [vmem:[#allocation38_spill] sm:$0xff] }
  0xf4   : > { %v1249_v57 = vadd.f32 %v1219_v27, %v3083_v37  ;;  %v817_v53 = vmul.f32 %v704_v6, %v4044_v7  ;;  %v816_v60 = vmul.f32 %v699_v29, %v4045_v46  ;;  %v987_v8 = vadd.f32 %v955_v49, %v4046_v15  ;;  %v709_v4 = vpop.permute.xlu0 %708  ;;  %v4050_v48 = vld [vmem:[#allocation18_spill] sm:$0xff]  ;;  %v4052_v49 = vld [vmem:[#allocation35_spill] sm:$0xff]  ;;  %v4056_v15 = vld [vmem:[#allocation121_spill] sm:$0xff] }
  0xf5   : > { %1621 = vst [vmem:[%s3421_s6 + $0x28] sm:$0xff] %v1527_v1  ;;  %v1526_v61 = vadd.f32 %v1496_v44, %v1276_v39  ;;  %v954_v12 = vmul.f32 %v4028_v30, %v814_v13  ;;  %v1218_v33 = vmul.f32 %v3372_v56, %v814_v13  ;;  %v1498_v17 = vadd.f32 %v1468_v21, %v4047_v20  ;;  %v4051_v6 = vld [vmem:[#allocation22_spill] sm:$0xff]  ;;  %v4054_v0 = vld [vmem:[#allocation23_spill] sm:$0xff] }
  0xf6   : > { %v1279_v37 = vadd.f32 %v1249_v57, %v1023_v11  ;;  %v1472_v42 = vmul.f32 %v4036_v10, %v814_v13  ;;  %v957_v54 = vmul.f32 %v4028_v30, %v817_v53  ;;  %v1501_v51 = vadd.f32 %v1471_v47, %v4048_v24  ;;  %v4053_v47 = vld [vmem:[#allocation25_spill] sm:$0xff]  ;;  %v4055_v57 = vld [vmem:[#allocation24_spill] sm:$0xff] }
  0xf7   : > { %v1022_v44 = vadd.f32 %v3392_v23, %v984_v14  ;;  %1620 = vst [vmem:[%s3421_s6 + $0x20] sm:$0xff] %v1526_v61  ;;  %v1248_v62 = vadd.f32 %v1218_v33, %v4049_v2  ;;  %v1221_v31 = vmul.f32 %v3372_v56, %v817_v53  ;;  %v1500_v50 = vadd.f32 %v1470_v3, %v4050_v48  ;;  %v724_v14 = vpop.permute.xlu1 %723 }
  0xf8   : > { %v1529_v19 = vadd.f32 %v1499_v36, %v1279_v37  ;;  %v986_v21 = vadd.f32 %v954_v12, %v4051_v6  ;;  %v956_v29 = vmul.f32 %v4028_v30, %v816_v60  ;;  %v1025_v16 = vadd.f32 %v3392_v23, %v987_v8  ;;  %v719_v39 = vpop.permute.xlu0 %718 }
  0xf9   : > { %v1503_v27 = vadd.f32 %v1473_v63, %v4052_v49  ;;  %v1278_v11 = vadd.f32 %v1248_v62, %v1022_v44  ;;  %v1251_v1 = vadd.f32 %v1221_v31, %v4053_v47  ;;  %v1502_v13 = vadd.f32 %v1472_v42, %v4054_v0  ;;  %v4057_v63 = vld [vmem:[#allocation122_spill] sm:$0xff]  ;;  %v4058_v42 = vld [vmem:[#allocation123_spill] sm:$0xff] }
  0xfa   : > { %1623 = vst [vmem:[%s3421_s6 + $0x38] sm:$0xff] %v1529_v19  ;;  %v989_v3 = vadd.f32 %v957_v54, %v4055_v57  ;;  %v1475_v36 = vmul.f32 %v4036_v10, %v817_v53  ;;  %v1220_v7 = vmul.f32 %v3372_v56, %v816_v60  ;;  %v819_v8 = vmul.f32 %v714_v43, %v4056_v15 }
  0xfb   : > { %v1528_v46 = vadd.f32 %v1498_v17, %v1278_v11  ;;  %v1281_v61 = vadd.f32 %v1251_v1, %v1025_v16  ;;  %v818_v12 = vmul.f32 %v709_v4, %v4057_v63  ;;  %v1024_v33 = vadd.f32 %v3392_v23, %v986_v21  ;;  %v734_v43 = vpop.permute.xlu1 %733  ;;  %v4059_v4 = vld [vmem:[#allocation26_spill] sm:$0xff]  ;;  %v4062_v11 = vld [vmem:[#allocation45_spill] sm:$0xff]  ;;  %v4063_v1 = vld [vmem:[#allocation27_spill] sm:$0xff] }
  0xfc   : > { %v988_v20 = vadd.f32 %v956_v29, %v3119_v45  ;;  %v1250_v37 = vadd.f32 %v1220_v7, %v3122_v38  ;;  %v821_v24 = vmul.f32 %v724_v14, %v4058_v42  ;;  %v1474_v53 = vmul.f32 %v4036_v10, %v816_v60  ;;  %v729_v2 = vpop.permute.xlu0 %728  ;;  %v4061_v60 = vld [vmem:[#allocation28_spill] sm:$0xff]  ;;  %v4067_v42 = vld [vmem:[#allocation34_spill] sm:$0xff] }
  0xfd   : > { %1622 = vst [vmem:[%s3421_s6 + $0x30] sm:$0xff] %v1528_v46  ;;  %v1531_v54 = vadd.f32 %v1501_v51, %v1281_v61  ;;  %v959_v17 = vmul.f32 %v4028_v30, %v819_v8  ;;  %v1223_v44 = vmul.f32 %v3372_v56, %v819_v8  ;;  %v1505_v62 = vadd.f32 %v1475_v36, %v4059_v4  ;;  %v4060_v51 = vld [vmem:[#allocation47_spill] sm:$0xff]  ;;  %v4065_v63 = vld [vmem:[#allocation124_spill] sm:$0xff] }
  0xfe   : > { %v1280_v31 = vadd.f32 %v1250_v37, %v1024_v33  ;;  %v958_v48 = vmul.f32 %v4028_v30, %v818_v12  ;;  %v1222_v45 = vmul.f32 %v3372_v56, %v818_v12  ;;  %v1027_v38 = vadd.f32 %v3392_v23, %v989_v3  ;;  %v4064_v61 = vld [vmem:[#allocation31_spill] sm:$0xff] }
  0xff   : > { %1625 = vst [vmem:[%s3421_s6 + $0x48] sm:$0xff] %v1531_v54  ;;  %v991_v19 = vadd.f32 %v959_v17, %v4060_v51  ;;  %v1253_v6 = vadd.f32 %v1223_v44, %v4061_v60  ;;  %v961_v21 = vmul.f32 %v4028_v30, %v821_v24  ;;  %v1026_v29 = vadd.f32 %v3392_v23, %v988_v20  ;;  %v744_v36 = vpop.permute.xlu1 %743  ;;  %v4066_v20 = vld [vmem:[#allocation53_spill] sm:$0xff]  ;;  %v4069_v17 = vld [vmem:[#allocation30_spill] sm:$0xff] }
 0x100   : > { %v1530_v16 = vadd.f32 %v1500_v50, %v1280_v31  ;;  %v1477_v49 = vmul.f32 %v4036_v10, %v819_v8  ;;  %v1252_v47 = vadd.f32 %v1222_v45, %v4062_v11  ;;  %v1504_v14 = vadd.f32 %v1474_v53, %v4063_v1  ;;  %v739_v7 = vpop.permute.xlu0 %738 }
 0x101   : > { %v1283_v0 = vadd.f32 %v1253_v6, %v1027_v38  ;;  %v1476_v57 = vmul.f32 %v4036_v10, %v818_v12  ;;  %v1225_v3 = vmul.f32 %v3372_v56, %v821_v24  ;;  %v1029_v46 = vadd.f32 %v3392_v23, %v991_v19  ;;  %v4068_v12 = vld [vmem:[#allocation125_spill] sm:$0xff] }
 0x102   : > { %1624 = vst [vmem:[%s3421_s6 + $0x40] sm:$0xff] %v1530_v16  ;;  %v990_v15 = vadd.f32 %v958_v48, %v4064_v61  ;;  %v1282_v50 = vadd.f32 %v1252_v47, %v1026_v29  ;;  %v820_v8 = vmul.f32 %v719_v39, %v4065_v63  ;;  %v993_v37 = vadd.f32 %v961_v21, %v4066_v20  ;;  %v4070_v48 = vld [vmem:[#allocation33_spill] sm:$0xff]  ;;  %v4072_v21 = vld [vmem:[#allocation126_spill] sm:$0xff] }
 0x103   : > { %v1533_v33 = vadd.f32 %v1503_v27, %v1283_v0  ;;  %v1255_v54 = vadd.f32 %v1225_v3, %v4067_v42  ;;  %v823_v53 = vmul.f32 %v734_v43, %v4068_v12  ;;  %v1507_v44 = vadd.f32 %v1477_v49, %v4069_v17  ;;  %v754_v19 = vpop.permute.xlu1 %753  ;;  %v4071_v43 = vld [vmem:[#allocation37_spill] sm:$0xff] }
 0x104   : > { %v1532_v4 = vadd.f32 %v1502_v13, %v1282_v50  ;;  %v960_v31 = vmul.f32 %v4028_v30, %v820_v8  ;;  %v1224_v45 = vmul.f32 %v3372_v56, %v820_v8  ;;  %v1506_v38 = vadd.f32 %v1476_v57, %v4070_v48  ;;  %v749_v1 = vpop.permute.xlu0 %748  ;;  %v4074_v50 = vld [vmem:[#allocation127_spill] sm:$0xff]  ;;  %v4080_v48 = vld [vmem:[#allocation54_spill] sm:$0xff] }
 0x105   : > { %1627 = vst [vmem:[%s3421_s6 + $0x58] sm:$0xff] %v1533_v33  ;;  %v1285_v51 = vadd.f32 %v1255_v54, %v1029_v46  ;;  %v963_v39 = vmul.f32 %v4028_v30, %v823_v53  ;;  %v1227_v27 = vmul.f32 %v3372_v56, %v823_v53  ;;  %v1028_v60 = vadd.f32 %v3392_v23, %v990_v15  ;;  %v4077_v54 = vld [vmem:[#allocation63_spill] sm:$0xff] }
 0x106   : > { %1626 = vst [vmem:[%s3421_s6 + $0x50] sm:$0xff] %v1532_v4  ;;  %v992_v6 = vadd.f32 %v960_v31, %v4071_v43  ;;  %v1254_v13 = vadd.f32 %v1224_v45, %v3176_v25  ;;  %v822_v29 = vmul.f32 %v729_v2, %v4072_v21  ;;  %v1031_v16 = vadd.f32 %v3392_v23, %v993_v37  ;;  %v4073_v2 = vld [vmem:[#allocation39_spill] sm:$0xff]  ;;  %v4076_v37 = vld [vmem:[#allocation41_spill] sm:$0xff]  ;;  %v4079_v31 = vld [vmem:[#allocation36_spill] sm:$0xff] }
 0x107   : > { %v1479_v49 = vmul.f32 %v4036_v10, %v821_v24  ;;  %v1535_v11 = vadd.f32 %v1505_v62, %v1285_v51  ;;  %v1257_v47 = vadd.f32 %v1227_v27, %v3186_v28  ;;  %v1478_v57 = vmul.f32 %v4036_v10, %v820_v8  ;;  %v4075_v8 = vld [vmem:[#allocation128_spill] sm:$0xff]  ;;  %v764_v4 = vpop.permute.xlu1 %763 }
 0x108   : > { %v1284_v0 = vadd.f32 %v1254_v13, %v1028_v60  ;;  %v1481_v3 = vmul.f32 %v4036_v10, %v823_v53  ;;  %v962_v46 = vmul.f32 %v4028_v30, %v822_v29  ;;  %v1030_v25 = vadd.f32 %v3392_v23, %v992_v6  ;;  %v4078_v53 = vld [vmem:[#allocation129_spill] sm:$0xff]  ;;  %v4082_v6 = vld [vmem:[#allocation43_spill] sm:$0xff]  ;;  %v4083_v21 = vld [vmem:[#allocation64_spill] sm:$0xff] }
 0x109   : > { %1629 = vst [vmem:[%s3421_s6 + $0x68] sm:$0xff] %v1535_v11  ;;  %v995_v61 = vadd.f32 %v963_v39, %v4073_v2  ;;  %v1287_v15 = vadd.f32 %v1257_v47, %v1031_v16  ;;  %v1226_v24 = vmul.f32 %v3372_v56, %v822_v29  ;;  %v1480_v28 = vmul.f32 %v4036_v10, %v822_v29  ;;  %v4084_v11 = vld [vmem:[#allocation42_spill] sm:$0xff] }
 0x10a   : > { %v1534_v62 = vadd.f32 %v1504_v14, %v1284_v0  ;;  %v825_v63 = vmul.f32 %v744_v36, %v4074_v50  ;;  %v824_v33 = vmul.f32 %v739_v7, %v4075_v8  ;;  %v994_v42 = vadd.f32 %v962_v46, %v4076_v37  ;;  %v4081_v36 = vld [vmem:[#allocation40_spill] sm:$0xff]  ;;  %v4087_v8 = vld [vmem:[#allocation130_spill] sm:$0xff]  ;;  %v4088_v37 = vld [vmem:[#allocation49_spill] sm:$0xff] }
 0x10b   : > { %v1537_v20 = vadd.f32 %v1507_v44, %v1287_v15  ;;  %v1256_v12 = vadd.f32 %v1226_v24, %v4077_v54  ;;  %v827_v17 = vmul.f32 %v754_v19, %v4078_v53  ;;  %v1509_v45 = vadd.f32 %v1479_v49, %v4079_v31  ;;  %v759_v19 = vpop.permute.xlu0 %758  ;;  %v4086_v24 = vld [vmem:[#allocation46_spill] sm:$0xff] }
 0x10c   : > { %v1508_v51 = vadd.f32 %v1478_v57, %v4080_v48  ;;  %1628 = vst [vmem:[%s3421_s6 + $0x60] sm:$0xff] %v1534_v62  ;;  %v965_v14 = vmul.f32 %v4028_v30, %v825_v63  ;;  %v1229_v39 = vmul.f32 %v3372_v56, %v825_v63  ;;  %v1511_v27 = vadd.f32 %v1481_v3, %v4081_v36  ;;  %v4085_v57 = vld [vmem:[#allocation48_spill] sm:$0xff]  ;;  %v4089_v54 = vld [vmem:[#allocation50_spill] sm:$0xff] }
 0x10d   : > { %1631 = vst [vmem:[%s3421_s6 + $0x78] sm:$0xff] %v1537_v20  ;;  %v1286_v7 = vadd.f32 %v1256_v12, %v1030_v25  ;;  %v964_v44 = vmul.f32 %v4028_v30, %v824_v33  ;;  %v1228_v60 = vmul.f32 %v3372_v56, %v824_v33  ;;  %v1033_v43 = vadd.f32 %v3392_v23, %v995_v61  ;;  %v4090_v12 = vld [vmem:[#allocation131_spill] sm:$0xff]  ;;  %v4091_v36 = vld [vmem:[#allocation44_spill] sm:$0xff] }
 0x10e   : > { %v997_v13 = vadd.f32 %v965_v14, %v4082_v6  ;;  %v1259_v29 = vadd.f32 %v1229_v39, %v4083_v21  ;;  %v967_v16 = vmul.f32 %v4028_v30, %v827_v17  ;;  %v1032_v49 = vadd.f32 %v3392_v23, %v994_v42  ;;  %v4094_v6 = vld [vmem:[#allocation132_spill] sm:$0xff] }
 0x10f   : > { %v1510_v47 = vadd.f32 %v1480_v28, %v4084_v11  ;;  %v1536_v0 = vadd.f32 %v1506_v38, %v1286_v7  ;;  %v1258_v3 = vadd.f32 %v1228_v60, %v4085_v57  ;;  %v1483_v25 = vmul.f32 %v4036_v10, %v825_v63  ;;  %v774_v28 = vpop.permute.xlu1 %773  ;;  %v769_v39 = vpop.permute.xlu0 %768  ;;  %v4095_v21 = vld [vmem:[#allocation68_spill] sm:$0xff] }
 0x110   : > { %v1289_v46 = vadd.f32 %v1259_v29, %v1033_v43  ;;  %v1482_v2 = vmul.f32 %v4036_v10, %v824_v33  ;;  %v1231_v61 = vmul.f32 %v3372_v56, %v827_v17  ;;  %v1035_v15 = vadd.f32 %v3392_v23, %v997_v13 }
 0x111   : > { %1630 = vst [vmem:[%s3421_s6 + $0x70] sm:$0xff] %v1536_v0  ;;  %v996_v62 = vadd.f32 %v964_v44, %v4086_v24  ;;  %v1288_v50 = vadd.f32 %v1258_v3, %v1032_v49  ;;  %v826_v20 = vmul.f32 %v749_v1, %v4087_v8  ;;  %v999_v42 = vadd.f32 %v967_v16, %v4088_v37  ;;  %v4096_v0 = vld [vmem:[#allocation51_spill] sm:$0xff] }
 0x112   : > { %v1539_v38 = vadd.f32 %v1509_v45, %v1289_v46  ;;  %v1261_v63 = vadd.f32 %v1231_v61, %v4089_v54  ;;  %v829_v33 = vmul.f32 %v764_v4, %v4090_v12  ;;  %v1485_v31 = vmul.f32 %v4036_v10, %v827_v17  ;;  %v4092_v4 = vld [vmem:[#allocation70_spill] sm:$0xff]  ;;  %v4093_v17 = vld [vmem:[#allocation55_spill] sm:$0xff] }
 0x113   : > { %v1538_v53 = vadd.f32 %v1508_v51, %v1288_v50  ;;  %v966_v48 = vmul.f32 %v4028_v30, %v826_v20  ;;  %v1230_v14 = vmul.f32 %v3372_v56, %v826_v20  ;;  %v1513_v7 = vadd.f32 %v1483_v25, %v4091_v36  ;;  %v784_v61 = vpop.permute.xlu1 %783  ;;  %v4098_v50 = vld [vmem:[#allocation133_spill] sm:$0xff]  ;;  %v779_v37 = vpop.permute.xlu0 %778  ;;  %v4100_v12 = vld [vmem:[#allocation135_spill] sm:$0xff] }
 0x114   : > { %1633 = vst [vmem:[%s3421_s6 + $0x88] sm:$0xff] %v1539_v38  ;;  %v1291_v1 = vadd.f32 %v1261_v63, %v1035_v15  ;;  %v969_v45 = vmul.f32 %v4028_v30, %v829_v33  ;;  %v1233_v44 = vmul.f32 %v3372_v56, %v829_v33  ;;  %v1034_v60 = vadd.f32 %v3392_v23, %v996_v62  ;;  %v4097_v15 = vld [vmem:[#allocation77_spill] sm:$0xff]  ;;  %v4099_v38 = vld [vmem:[#allocation134_spill] sm:$0xff] }
 0x115   : > { %1632 = vst [vmem:[%s3421_s6 + $0x80] sm:$0xff] %v1538_v53  ;;  %v998_v51 = vadd.f32 %v966_v48, %v4092_v4  ;;  %v1260_v43 = vadd.f32 %v1230_v14, %v4093_v17  ;;  %v828_v13 = vmul.f32 %v759_v19, %v4094_v6  ;;  %v1512_v29 = vadd.f32 %v1482_v2, %v4095_v21 }
 0x116   : > { %v1037_v16 = vadd.f32 %v3392_v23, %v999_v42  ;;  %v1541_v49 = vadd.f32 %v1511_v27, %v1291_v1  ;;  %v1263_v11 = vadd.f32 %v1233_v44, %v3277_v34  ;;  %v1515_v57 = vadd.f32 %v1485_v31, %v4096_v0  ;;  %v4101_v31 = vld [vmem:[#allocation56_spill] sm:$0xff] }
 0x117   : > { %v1290_v3 = vadd.f32 %v1260_v43, %v1034_v60  ;;  %v1484_v46 = vmul.f32 %v4036_v10, %v826_v20  ;;  %v968_v25 = vmul.f32 %v4028_v30, %v828_v13  ;;  %v1001_v24 = vadd.f32 %v969_v45, %v4097_v15  ;;  %v794_v43 = vpop.permute.xlu1 %793 }
 0x118   : > { %1635 = vst [vmem:[%s3421_s6 + $0x98] sm:$0xff] %v1541_v49  ;;  %v1293_v19 = vadd.f32 %v1263_v11, %v1037_v16  ;;  %v1487_v2 = vmul.f32 %v4036_v10, %v829_v33  ;;  %v1232_v62 = vmul.f32 %v3372_v56, %v828_v13  ;;  %v1036_v34 = vadd.f32 %v3392_v23, %v998_v51  ;;  %v789_v16 = vpop.permute.xlu0 %788  ;;  %v4103_v11 = vld [vmem:[#allocation136_spill] sm:$0xff] }
 0x119   : > { %v1540_v27 = vadd.f32 %v1510_v47, %v1290_v3  ;;  %v831_v8 = vmul.f32 %v774_v28, %v4098_v50  ;;  %v830_v20 = vmul.f32 %v769_v39, %v4099_v38  ;;  %v1000_v54 = vadd.f32 %v968_v25, %v3347_v59  ;;  %v4102_v28 = vld [vmem:[#allocation60_spill] sm:$0xff] }
 0x11a   : > { %v1543_v42 = vadd.f32 %v1513_v7, %v1293_v19  ;;  %v1262_v63 = vadd.f32 %v1232_v62, %v3350_v18  ;;  %v833_v53 = vmul.f32 %v784_v61, %v4100_v12  ;;  %v1514_v33 = vadd.f32 %v1484_v46, %v4101_v31  ;;  %v4104_v46 = vld [vmem:[#allocation14_spill] sm:$0xff]  ;;  %v4107_v31 = vld [vmem:[#allocation81_spill] sm:$0xff] }
 0x11b   : > { %1634 = vst [vmem:[%s3421_s6 + $0x90] sm:$0xff] %v1540_v27  ;;  %v1486_v48 = vmul.f32 %v4036_v10, %v828_v13  ;;  %v971_v14 = vmul.f32 %v4028_v30, %v831_v8  ;;  %v1235_v47 = vmul.f32 %v3372_v56, %v831_v8  ;;  %v1517_v36 = vadd.f32 %v1487_v2, %v4102_v28  ;;  %v4106_v27 = vld [vmem:[#allocation32_spill] sm:$0xff]  ;;  %v4108_v28 = vld [vmem:[#allocation19_spill] sm:$0xff] }
 0x11c   : > { %1637 = vst [vmem:[%s3421_s6 + $0xa8] sm:$0xff] %v1543_v42  ;;  %v1292_v39 = vadd.f32 %v1262_v63, %v1036_v34  ;;  %v970_v7 = vmul.f32 %v4028_v30, %v830_v20  ;;  %v1234_v59 = vmul.f32 %v3372_v56, %v830_v20  ;;  %v1039_v18 = vadd.f32 %v3392_v23, %v1001_v24 }
 0x11d   : > { %v1003_v1 = vadd.f32 %v971_v14, %v3356_v5  ;;  %v1265_v45 = vadd.f32 %v1235_v47, %v3359_v22  ;;  %v973_v44 = vmul.f32 %v4028_v30, %v833_v53  ;;  %v1038_v60 = vadd.f32 %v3392_v23, %v1000_v54  ;;  %v799_v54 = vpop.permute.xlu0 %798 }
 0x11e   : > { %v1542_v4 = vadd.f32 %v1512_v29, %v1292_v39  ;;  %v1489_v51 = vmul.f32 %v4036_v10, %v831_v8  ;;  %v1264_v17 = vadd.f32 %v1234_v59, %v3375_v40  ;;  %v1516_v6 = vadd.f32 %v1486_v48, %v3353_v35  ;;  %v804_v8 = vpop.permute.xlu1 %803  ;;  %v4109_v39 = vld [vmem:[#allocation61_spill] sm:$0xff] }
 0x11f   : > { %v1295_v13 = vadd.f32 %v1265_v45, %v1039_v18  ;;  %v1002_v21 = vadd.f32 %v970_v7, %v3365_v55  ;;  %v1237_v5 = vmul.f32 %v3372_v56, %v833_v53  ;;  %v1041_v22 = vadd.f32 %v3392_v23, %v1003_v1  ;;  %v4110_v7 = vld [vmem:[#allocation20_spill] sm:$0xff] }
 0x120   : > { %1636 = vst [vmem:[%s3421_s6 + $0xa0] sm:$0xff] %v1542_v4  ;;  %v1294_v49 = vadd.f32 %v1264_v17, %v1038_v60  ;;  %v1488_v29 = vmul.f32 %v4036_v10, %v830_v20  ;;  %v832_v0 = vmul.f32 %v779_v37, %v4103_v11  ;;  %v1005_v3 = vadd.f32 %v973_v44, %v3381_v52  ;;  %v4105_v52 = vld [vmem:[#allocation58_spill] sm:$0xff]  ;;  %v4111_v1 = vld [vmem:[#allocation84_spill] sm:$0xff] }
 0x121   : > { %v1545_v40 = vadd.f32 %v1515_v57, %v1295_v13  ;;  %v1267_v35 = vadd.f32 %v1237_v5, %v3384_v41  ;;  %v835_v55 = vmul.f32 %v794_v43, %v4104_v46  ;;  %v1519_v25 = vadd.f32 %v1489_v51, %v3362_v9  ;;  %v4112_v44 = vld [vmem:[#allocation62_spill] sm:$0xff]  ;;  %v4113_v13 = vld [vmem:[#allocation52_spill] sm:$0xff] }
 0x122   : > { %v1544_v61 = vadd.f32 %v1514_v33, %v1294_v49  ;;  %v972_v15 = vmul.f32 %v4028_v30, %v832_v0  ;;  %v1236_v24 = vmul.f32 %v3372_v56, %v832_v0  ;;  %v1040_v19 = vadd.f32 %v3392_v23, %v1002_v21  ;;  %v4115_v11 = vld [vmem:[#allocation66_spill] sm:$0xff] }
 0x123   : > { %1639 = vst [vmem:[%s3421_s6 + $0xb8] sm:$0xff] %v1545_v40  ;;  %v1297_v2 = vadd.f32 %v1267_v35, %v1041_v22  ;;  %v975_v62 = vmul.f32 %v4028_v30, %v835_v55  ;;  %v1239_v57 = vmul.f32 %v3372_v56, %v835_v55  ;;  %v1493_v9 = vmul.f32 %v4036_v10, %v835_v55  ;;  %v4117_v35 = vld [vmem:[#allocation87_spill] sm:$0xff] }
 0x124   : > { %1638 = vst [vmem:[%s3421_s6 + $0xb0] sm:$0xff] %v1544_v61  ;;  %v1004_v41 = vadd.f32 %v972_v15, %v4105_v52  ;;  %v1266_v34 = vadd.f32 %v1236_v24, %v3387_v32  ;;  %v834_v50 = vmul.f32 %v789_v16, %v4106_v27  ;;  %v1043_v38 = vadd.f32 %v3392_v23, %v1005_v3  ;;  %v4114_v16 = vld [vmem:[#allocation65_spill] sm:$0xff]  ;;  %v4116_v3 = vld [vmem:[#allocation67_spill] sm:$0xff] }
 0x125   : > { %v1547_v20 = vadd.f32 %v1517_v36, %v1297_v2  ;;  %v1007_v37 = vadd.f32 %v975_v62, %v3297_v26  ;;  %v1269_v42 = vadd.f32 %v1239_v57, %v3300_v58  ;;  %v1491_v63 = vmul.f32 %v4036_v10, %v833_v53 }
 0x126   : > { %v1296_v12 = vadd.f32 %v1266_v34, %v1040_v19  ;;  %v1523_v33 = vadd.f32 %v1493_v9, %v4107_v31  ;;  %v974_v32 = vmul.f32 %v4028_v30, %v834_v50  ;;  %v1238_v14 = vmul.f32 %v3372_v56, %v834_v50 }
 0x127   : > { %1641 = vst [vmem:[%s3421_s6 + $0xc8] sm:$0xff] %v1547_v20  ;;  %v1299_v48 = vadd.f32 %v1269_v42, %v1043_v38  ;;  %v1492_v47 = vmul.f32 %v4036_v10, %v834_v50  ;;  %v837_v26 = vmul.f32 %v804_v8, %v4108_v28  ;;  %v1042_v58 = vadd.f32 %v3392_v23, %v1004_v41 }
 0x128   : > { %v1546_v36 = vadd.f32 %v1516_v6, %v1296_v12  ;;  %v1006_v53 = vadd.f32 %v974_v32, %v4109_v39  ;;  %v836_v59 = vmul.f32 %v799_v54, %v4110_v7  ;;  %v1268_v45 = vadd.f32 %v1238_v14, %v4111_v1 }
 0x129   : > { %v1549_v18 = vadd.f32 %v1519_v25, %v1299_v48  ;;  %v1522_v60 = vadd.f32 %v1492_v47, %v4112_v44  ;;  %v977_v4 = vmul.f32 %v4028_v30, %v837_v26  ;;  %v1490_v51 = vmul.f32 %v4036_v10, %v832_v0  ;;  %v4119_v25 = vld [vmem:[#allocation59_spill] sm:$0xff] }
 0x12a   : > { %1640 = vst [vmem:[%s3421_s6 + $0xc0] sm:$0xff] %v1546_v36  ;;  %v1241_v17 = vmul.f32 %v3372_v56, %v837_v26  ;;  %v976_v43 = vmul.f32 %v4028_v30, %v836_v59  ;;  %v1240_v6 = vmul.f32 %v3372_v56, %v836_v59  ;;  %v1518_v21 = vadd.f32 %v1488_v29, %v4113_v13  ;;  %v4118_v30 = vld [vmem:[#allocation57_spill] sm:$0xff] }
 0x12b   : > { %1643 = vst [vmem:[%s3421_s6 + $0xd8] sm:$0xff] %v1549_v18  ;;  %v1298_v5 = vadd.f32 %v1268_v45, %v1042_v58  ;;  %v1009_v22 = vadd.f32 %v977_v4, %v4114_v16  ;;  %v1045_v49 = vadd.f32 %v3392_v23, %v1007_v37  ;;  %v1044_v0 = vadd.f32 %v3392_v23, %v1006_v53 }
 0x12c   : > { %v1271_v40 = vadd.f32 %v1241_v17, %v4115_v11  ;;  %v1008_v10 = vadd.f32 %v976_v43, %v4116_v3  ;;  %v1270_v46 = vadd.f32 %v1240_v6, %v4117_v35  ;;  %v1521_v56 = vadd.f32 %v1491_v63, %v4118_v30 }
 0x12d   : > { %v1548_v29 = vadd.f32 %v1518_v21, %v1298_v5  ;;  %v1047_v55 = vadd.f32 %v3392_v23, %v1009_v22  ;;  %v1520_v61 = vadd.f32 %v1490_v51, %v4119_v25 }
 0x12e   : > { %v1301_v15 = vadd.f32 %v1271_v40, %v1045_v49  ;;  %v1046_v24 = vadd.f32 %v3392_v23, %v1008_v10  ;;  %v1300_v19 = vadd.f32 %v1270_v46, %v1044_v0 }
 0x12f   : > { %1642 = vst [vmem:[%s3421_s6 + $0xd0] sm:$0xff] %v1548_v29  ;;  %v1553_v2 = vadd.f32 %v1523_v33, %v1047_v55 }
 0x130   : > { %v1551_v62 = vadd.f32 %v1521_v56, %v1301_v15  ;;  %v1550_v57 = vadd.f32 %v1520_v61, %v1300_v19  ;;  %v1552_v52 = vadd.f32 %v1522_v60, %v1046_v24 }
 0x131   : > { %1647 = vst [vmem:[%s3421_s6 + $0xf8] sm:$0xff] %v1553_v2 }
 0x132   : > { %1645 = vst [vmem:[%s3421_s6 + $0xe8] sm:$0xff] %v1551_v62  ;;  %1644 = vst [vmem:[%s3421_s6 + $0xe0] sm:$0xff] %v1550_v57 }
 0x133   : > { %1646 = vst [vmem:[%s3421_s6 + $0xf0] sm:$0xff] %v1552_v52 }
 0x134   : > { %1797 = shalt.err (!%p1794_p3)
}
 0x135   : > { %s1798_s15 = scalar_lea.hbm %s3671_s30, 4096  ;;  %s1802_s23 = scalar_lea.hbm %s3727_s5, 8192 }
 0x136   : > { %p1799_p4 = scmp.ne.s32.totalorder %s3671_s30, %s1798_s15  ;;  %p1803_p9 = scmp.lt.u32.totalorder %s3671_s30, %s3727_s5 }
 0x137   : > { %p1804_p10 = scmp.lt.u32.totalorder %s1802_s23, %s1798_s15  ;;  %p1806_p12 = scmp.lt.u32.totalorder %s1798_s15, %s3671_s30 }
 0x138   : > { %p1800_p7 = pnand %p1799_p4, %p1920_p5 }
 0x139   : > { %p1805_p11 = por %p1804_p10, %p1803_p9 }
 0x13a   : > { %p1801_p8 = pneg %p1800_p7 }
 0x13b   : > { %p1807_p13 = por %p1806_p12, %p1805_p11 }
 0x13d   : > { %p1808_p0 = pnand %p1807_p13, %p1801_p8 }
 0x13f   : > { %1811 = shalt.err (!%p1808_p0)
}
 0x140   : > { %s1850_s6 = smov 128   ;;  %s1851_s7 = smov 8  }
 0x141   : > { %1740 = dma.vmem_to_hbm [thread:$0]  (%p1920_p5), %s3673_s8, 4096, %s3671_s30, %s3681_s10, %s1850_s6, %s1850_s6, %s1851_s7  }
 0x142 PF: > { %p1746_p1 = scmp.ge.s32.totalorder %s1846_s21, 2  ;;  %s1677_s22 = sand.u32 1, %s1834_s18  }
 0x143   : > { %s1678_s9 = scalar_lea.sflag [#allocation4], %s1677_s22 }
 0x144   : > { %p1743_p2 = pnand %p1746_p1, %p1924_p6 }
 0x146   : > { %1829 = dma.done.wait (!%p1743_p2), %s1678_s9, 4096  }
 0x147   : > { %1831 = vsyncadd (!%p1743_p2), %s1678_s9, 4294963200  ;;  %p15_p3 = scmp.ge.s32.totalorder %s1907_s24, 4   ;;  %s4120_s18 = smov %s1838_s19 }
 0x148   : > { %s4121_s19 = smov %s1842_s20  ;;  %s4122_s20 = smov %s1918_s27 }
 0x149   : > { %s4123_s21 = smov %s1907_s24  ;;  %17 = sbr.rel (!%p15_p3) target bundleno = 3 (0x3), region = 75 }
 0x150   :  { %1683 = vsyncpa [#allocation4], 1 }
 0x151   :  { %1685 = vsyncpa [#allocation4 + $0x1], 1 }

</bundles_post_ra>
